<compile_context>
chip_gen: v7x
topology: tpu7x:2x2x1
jax: 0.10.0
libtpu: 0.0.40
codegen_flags: <defaults>
</compile_context>

<pallas_src>
import functools

import numpy as np
import jax
import jax.numpy as jnp
from jax import lax
from jax.experimental import pallas as pl
from jax.experimental.pallas import tpu as pltpu

_LANE = 128
_SUBLANE = 32  # safe second-minor multiple for int8 / bf16 / f32 blocks


def _round_up(x, m):
    return (x + m - 1) // m * m


def _tree_sum(parts):
    while len(parts) > 1:
        nxt = [parts[i] + parts[i + 1] for i in range(0, len(parts) - 1, 2)]
        if len(parts) % 2:
            nxt.append(parts[-1])
        parts = nxt
    return parts[0]


def _fused_kernel(x_ref, w_ref, b_ref, beta_ref, alpha_ref, mask_ref,
                  d0_ref, mem0_ref, spk0_ref, vth_ref,
                  mem_out_ref, spk_out_ref, d_state_ref,
                  mem_sc, spk_sc, *,
                  out_pad, obr_flat, out_dim, branch,
                  time_tile, batch_tile, seq_len, gate_tail):
    tb = pl.program_id(1)

    @pl.when(tb == 0)
    def _init():
        # start of this batch tile's time sweep: load carried state
        d_state_ref[...] = d0_ref[...]
        mem_sc[...] = mem0_ref[...]
        spk_sc[...] = spk0_ref[...]

    # Dense part for the whole time block at once (independent across t):
    # (TT*TB, Dp) @ (Dp, OBr) on the MXU, f32 accumulate.  (1-beta) is already folded
    # into W / bias at pack time.
    dp = x_ref.shape[2]
    x = x_ref[...].astype(jnp.bfloat16).reshape(time_tile * batch_tile, dp)
    dense_all = jnp.dot(x, w_ref[...], preferred_element_type=jnp.float32) + b_ref[...]

    beta = beta_ref[...]          # sigmoid(tau_n)  (resident, precomputed)
    alpha = alpha_ref[...]        # sigmoid(tau_m)  (resident, precomputed)
    one_m_alpha = 1.0 - alpha
    vth = vth_ref[...]

    d_state = d_state_ref[...]
    mem = mem_sc[...]
    spk = spk_sc[...]

    for tt in range(time_tile):
        dense_t = dense_all[tt * batch_tile:(tt + 1) * batch_tile, :]

        # dendritic low-pass filter: d = beta*d + (1-beta)*(x@W+b)  [(1-beta) folded]
        d_new = beta * d_state + dense_t
        if gate_tail:
            valid = (tb * time_tile + tt) < seq_len
            d_new = jnp.where(valid, d_new, d_state)
        d_state = d_new

        # l_input = d_input.sum(dim=2): branch sum over flat idx j*O + o.
        if branch == 1:
            l_input = d_new[:, :out_pad]
        elif out_dim % _LANE == 0:
            # lane-aligned static slices, tree add (pure VPU)
            l_input = _tree_sum([d_new[:, j * out_dim:(j + 1) * out_dim]
                                 for j in range(branch)])
        else:
            # XLU lane rotations (free slot next to the VPU), tree add
            parts = [d_new] + [pltpu.roll(d_new, shift=obr_flat - j * out_dim, axis=1)
                               for j in range(1, branch)]
            l_input = _tree_sum(parts)[:, :out_pad]

        # TODO(synk): mem_update_pra_rhythm is external to the provided source; this
        # implements the standard DH-SNN rhythm-gated LIF update (R_m=1, dt=1): the
        # rhythm mask gates the membrane update and the emitted spike; spike forward is
        # Heaviside(mem - v_th); soft reset uses the previous spike.
        mask_t = mask_ref[tt:tt + 1, :]
        mem_cand = mem * alpha + one_m_alpha * l_input - vth * spk
        mem = mem + mask_t * (mem_cand - mem)
        spk = (mem > vth).astype(jnp.float32) * mask_t

        mem_out_ref[tt] = mem.astype(mem_out_ref.dtype)
        spk_out_ref[tt] = spk.astype(spk_out_ref.dtype)

    d_state_ref[...] = d_state
    mem_sc[...] = mem
    spk_sc[...] = spk


def create_general_mask(dim, c_min, c_max, min_dc, max_dc, phase_shift_max, T=784 * 2):
    # Faithful numpy port of the torch mask construction.
    mask = []
    dc_steps = np.linspace(min_dc, max_dc, dim)
    cycles = np.linspace(c_min, c_max, dim)
    phase_shifts = np.linspace(0, int(phase_shift_max * c_max), dim)
    for cycle, dc, phase_shift in zip(cycles, dc_steps, phase_shifts):
        cycle = int(np.ceil(cycle))
        on_length = int(np.ceil(dc * cycle))
        off_length = cycle - on_length
        pattern = [1] * on_length + [0] * off_length
        phase_shift = int(np.round(phase_shift))
        pattern = pattern[-phase_shift:] + pattern[:-phase_shift]
        full_pattern = pattern * (T // cycle) + pattern[:T % cycle]
        mask.append(full_pattern)
    return jnp.asarray(np.array(mask, dtype=np.float32))


def build_params(key, input_dim, output_dim, branch, low_m=0.0, high_m=4.0,
                 low_n=0.0, high_n=4.0, cycle_min=3, cycle_max=10,
                 duty_cycle_min=0.02, duty_cycle_max=0.5, phase_max=0.5):
    """Raw parameters, matching the PyTorch module's layout.
    NOTE: create_mask/apply_mask (connectivity sparsification) is a separate module
    method that forward() does not invoke; weights here stay dense."""
    pad = (input_dim // branch * branch + branch - input_dim) % branch
    D0 = input_dim + pad
    OB = output_dim * branch
    k_w, k_b, k_m, k_n = jax.random.split(key, 4)
    bound = float(1.0 / np.sqrt(D0))
    weight = jax.random.uniform(k_w, (OB, D0), jnp.float32, -bound, bound)  # (out, in)
    bias = jax.random.uniform(k_b, (OB,), jnp.float32, -bound, bound)
    tau_m = jax.random.uniform(k_m, (output_dim,), jnp.float32, low_m, high_m)
    tau_n = jax.random.uniform(k_n, (output_dim, branch), jnp.float32, low_n, high_n)
    rhy_mask = create_general_mask(output_dim, cycle_min, cycle_max,
                                   duty_cycle_min, duty_cycle_max, phase_max)
    return weight, bias, tau_n, tau_m, rhy_mask, pad


def pack_params(weight, bias, tau_n, tau_m, rhy_mask, pad):
    """One-time packing into the kernel layout.

    Flat dendritic index f = j*O + o  (torch dense row o*branch + j), padded to a
    multiple of 128 lanes.  (1 - sigmoid(tau_n)) is folded into W / bias here so the
    kernel's dendrite update is just beta*d + dense'."""
    O, Br = tau_n.shape
    D0 = weight.shape[1]                       # input_dim + pad
    Op = _round_up(O, _LANE)
    Dp = _round_up(D0, _LANE)
    OBr = O * Br
    OBrp = _round_up(OBr, _LANE)

    beta = jax.nn.sigmoid(tau_n)               # (O, Br)
    omb = 1.0 - beta

    w_flat = (weight.reshape(O, Br, D0) * omb[:, :, None]) \
        .transpose(1, 0, 2).reshape(OBr, D0)                       # row f = j*O + o
    W = jnp.zeros((Dp, OBrp), jnp.float32).at[:D0, :OBr].set(w_flat.T).astype(jnp.bfloat16)

    b_flat = (bias.reshape(O, Br) * omb).T.reshape(OBr)
    bias_p = jnp.zeros((1, OBrp), jnp.float32).at[0, :OBr].set(b_flat)

    beta_p = jnp.zeros((1, OBrp), jnp.float32).at[0, :OBr].set(beta.T.reshape(OBr))
    alpha_p = jnp.zeros((1, Op), jnp.float32).at[0, :O].set(jax.nn.sigmoid(tau_m))

    # rhythm mask stored time-major: (T_total, Op); padded lanes are 0 (keeps padded
    # neurons inert: mem frozen at 0, spikes 0).
    mask_p = jnp.zeros((rhy_mask.shape[1], Op), jnp.float32).at[:, :O].set(rhy_mask.T)

    return dict(W=W, bias=bias_p, beta=beta_p, alpha=alpha_p, rhy_mask_t=mask_p,
                input_dim=D0 - pad, pad=pad, O=O, Op=Op, Br=Br, D0=D0, Dp=Dp,
                OBr=OBr, OBrp=OBrp)


def rhy_denri_forward_seq(input_spikes, t0, packed, state, *,
                          batch_tile=256, time_tile=8):
    """Run T timesteps of the module forward fused in one pallas_call.

    input_spikes: (T, B, input_dim) 0/1 spikes; step t uses rhy_mask[:, t0 + t].
    state = (d_input (B, O, Br), mem (B, O), spike (B, O), v_th (B, O))
    Returns (mem_seq (T, B, O) bf16, spike_seq (T, B, O) bf16, d_input_final (B, O, Br) f32).
    """
    d_input, mem, spike, v_th = state
    T, B, in_dim = input_spikes.shape
    O, Op, Br = packed["O"], packed["Op"], packed["Br"]
    Dp, OBr, OBrp = packed["Dp"], packed["OBr"], packed["OBrp"]

    # ---- batch tiling (aim for >= 2 parallel tiles: v7x has 2 TensorCores) ----
    Bp = _round_up(B, _SUBLANE)
    TB = min(Bp, _round_up(batch_tile, _SUBLANE))
    if Bp // TB < 2 and Bp >= 2 * _SUBLANE:
        TB = _round_up(Bp // 2, _SUBLANE)
    Bp = _round_up(Bp, TB)
    nB = Bp // TB

    # ---- time blocking ----
    assert T <= time_tile or time_tile % 8 == 0, "time_tile must be a multiple of 8"
    TT = T if T <= time_tile else time_tile
    T_pad = _round_up(T, TT)
    nT = T_pad // TT
    gate_tail = (T_pad != T)

    # ---- one-time padding: spikes stay int8 in HBM, cast to bf16 after the DMA ----
    x_seq = jnp.zeros((T_pad, Bp, Dp), jnp.int8)
    x_seq = x_seq.at[:T, :B, :in_dim].set(input_spikes.astype(jnp.int8))

    d0 = jnp.zeros((Bp, OBrp), jnp.float32)
    d0 = d0.at[:B, :OBr].set(d_input.transpose(0, 2, 1).reshape(B, OBr))  # f = j*O + o
    mem0 = jnp.zeros((Bp, Op), jnp.float32).at[:B, :O].set(mem)
    spk0 = jnp.zeros((Bp, Op), jnp.float32).at[:B, :O].set(spike)
    vth = jnp.zeros((Bp, Op), jnp.float32).at[:B, :O].set(v_th)

    mask_rows = lax.dynamic_slice_in_dim(packed["rhy_mask_t"], t0, T, 0)
    mask_seq = jnp.zeros((T_pad, Op), jnp.float32).at[:T].set(mask_rows)

    kernel = functools.partial(
        _fused_kernel, out_pad=Op, obr_flat=OBrp, out_dim=O, branch=Br,
        time_tile=TT, batch_tile=TB, seq_len=T, gate_tail=gate_tail)

    in_specs = [
        pl.BlockSpec((TT, TB, Dp), lambda b, t: (t, b, 0)),   # spikes (int8)
        pl.BlockSpec((Dp, OBrp), lambda b, t: (0, 0)),        # W' = W*(1-beta)   (resident)
        pl.BlockSpec((1, OBrp), lambda b, t: (0, 0)),         # b' = b*(1-beta)   (resident)
        pl.BlockSpec((1, OBrp), lambda b, t: (0, 0)),         # beta              (resident)
        pl.BlockSpec((1, Op), lambda b, t: (0, 0)),           # alpha             (resident)
        pl.BlockSpec((TT, Op), lambda b, t: (t, 0)),          # rhythm mask rows for block
        pl.BlockSpec((TB, OBrp), lambda b, t: (b, 0)),        # d_input init (per batch tile)
        pl.BlockSpec((TB, Op), lambda b, t: (b, 0)),          # mem init
        pl.BlockSpec((TB, Op), lambda b, t: (b, 0)),          # spike init
        pl.BlockSpec((TB, Op), lambda b, t: (b, 0)),          # v_th
    ]
    out_specs = (
        pl.BlockSpec((TT, TB, Op), lambda b, t: (t, b, 0)),   # mem per step  (bf16)
        pl.BlockSpec((TT, TB, Op), lambda b, t: (t, b, 0)),   # spike per step (bf16)
        pl.BlockSpec((TB, OBrp), lambda b, t: (b, 0)),        # final dendritic state
    )
    out_shape = (
        jax.ShapeDtypeStruct((T_pad, Bp, Op), jnp.bfloat16),
        jax.ShapeDtypeStruct((T_pad, Bp, Op), jnp.bfloat16),
        jax.ShapeDtypeStruct((Bp, OBrp), jnp.float32),
    )

    # VMEM budget: 3/4 of device capacity, capped at 96 MiB (v7x has 64 MiB per TC).
    try:
        vmem_cap = pltpu.get_tpu_info().vmem_capacity_bytes
    except Exception:
        vmem_cap = 128 * 1024 * 1024
    vmem_limit = int(min(vmem_cap * 3 // 4, 96 * 1024 * 1024))

    mem_seq, spk_seq, d_final = pl.pallas_call(
        kernel,
        grid=(nB, nT),
        in_specs=in_specs,
        out_specs=out_specs,
        out_shape=out_shape,
        scratch_shapes=[pltpu.VMEM((TB, Op), jnp.float32),    # mem carry
                        pltpu.VMEM((TB, Op), jnp.float32)],   # spike carry
        input_output_aliases={6: 2},                          # d0 -> final dendritic state
        compiler_params=pltpu.CompilerParams(
            dimension_semantics=("parallel", "arbitrary"),
            vmem_limit_bytes=vmem_limit),
    )(x_seq, packed["W"], packed["bias"], packed["beta"], packed["alpha"],
      mask_seq, d0, mem0, spk0, vth)

    d_out = d_final[:B, :OBr].reshape(B, Br, O).transpose(0, 2, 1)
    return mem_seq[:T, :B, :O], spk_seq[:T, :B, :O], d_out


def init_state(key, batch_size, output_dim, branch, vth):
    k1, k2, k3 = jax.random.split(key, 3)
    mem = jax.random.uniform(k1, (batch_size, output_dim), jnp.float32)
    spike = jax.random.uniform(k2, (batch_size, output_dim), jnp.float32)
    if branch == 1:
        d_input = jax.random.uniform(k3, (batch_size, output_dim, branch), jnp.float32)
    else:
        d_input = jnp.zeros((batch_size, output_dim, branch), jnp.float32)
    v_th = jnp.ones((batch_size, output_dim), jnp.float32) * vth
    return (d_input, mem, spike, v_th)


if __name__ == "__main__":
    input_dim, output_dim, branch, batch, vth = 30, 32, 4, 2, 0.5
    T = 8
    key = jax.random.PRNGKey(0)
    k_param, k_state, k_x = jax.random.split(key, 3)

    raw = build_params(k_param, input_dim, output_dim, branch)
    packed = pack_params(*raw)
    state = init_state(k_state, batch, output_dim, branch, vth)

    # binary input spikes for T timesteps
    input_spikes = (jax.random.uniform(k_x, (T, batch, input_dim)) > 0.7).astype(jnp.float32)

    fwd = jax.jit(lambda x, st: rhy_denri_forward_seq(x, 0, packed, st))
    mem_seq, spk_seq, d_final = fwd(input_spikes, state)
    jax.block_until_ready((mem_seq, spk_seq, d_final))

    assert mem_seq.shape == (T, batch, output_dim)
    assert spk_seq.shape == (T, batch, output_dim)
    assert d_final.shape == (batch, output_dim, branch)
    print("KERNEL_OK")
</pallas_src>

<mosaic_0001>
module attributes {stable_mosaic.version = 11 : i64} {
  func.func @_fused_kernel(%arg0: i32, %arg1: i32, %arg2: memref<8x32x128xi8, #tpu.memory_space<vmem>>, %arg3: memref<128x128xbf16, #tpu.memory_space<vmem>>, %arg4: memref<1x128xf32, #tpu.memory_space<vmem>>, %arg5: memref<1x128xf32, #tpu.memory_space<vmem>>, %arg6: memref<1x128xf32, #tpu.memory_space<vmem>>, %arg7: memref<8x128xf32, #tpu.memory_space<vmem>>, %arg8: memref<32x128xf32, #tpu.memory_space<vmem>>, %arg9: memref<32x128xf32, #tpu.memory_space<vmem>>, %arg10: memref<32x128xf32, #tpu.memory_space<vmem>>, %arg11: memref<32x128xf32, #tpu.memory_space<vmem>>, %arg12: memref<8x32x128xbf16, #tpu.memory_space<vmem>>, %arg13: memref<8x32x128xbf16, #tpu.memory_space<vmem>>, %arg14: memref<32x128xf32, #tpu.memory_space<vmem>>, %arg15: memref<32x128xf32, #tpu.memory_space<vmem>>, %arg16: memref<32x128xf32, #tpu.memory_space<vmem>>) attributes {dimension_semantics = [#tpu.dimension_semantics<parallel>, #tpu.dimension_semantics<arbitrary>], iteration_bounds = array<i64: 1, 1>, scalar_prefetch = 0 : i64, scratch_operands = 2 : i64, tpu.core_type = #tpu.core_type<tc>, window_params = [{transform_indices = @transform_0, window_bounds = array<i64: 8, 32, 128>}, {pipeline_mode = #tpu.pipeline_mode<synchronous>, transform_indices = @transform_1, window_bounds = array<i64: 128, 128>}, {pipeline_mode = #tpu.pipeline_mode<synchronous>, transform_indices = @transform_2, window_bounds = array<i64: 1, 128>}, {pipeline_mode = #tpu.pipeline_mode<synchronous>, transform_indices = @transform_3, window_bounds = array<i64: 1, 128>}, {pipeline_mode = #tpu.pipeline_mode<synchronous>, transform_indices = @transform_4, window_bounds = array<i64: 1, 128>}, {transform_indices = @transform_5, window_bounds = array<i64: 8, 128>}, {transform_indices = @transform_6, window_bounds = array<i64: 32, 128>}, {transform_indices = @transform_7, window_bounds = array<i64: 32, 128>}, {transform_indices = @transform_8, window_bounds = array<i64: 32, 128>}, {transform_indices = @transform_9, window_bounds = array<i64: 32, 128>}, {transform_indices = @transform_10, window_bounds = array<i64: 8, 32, 128>}, {transform_indices = @transform_11, window_bounds = array<i64: 8, 32, 128>}, {transform_indices = @transform_12, window_bounds = array<i64: 32, 128>}]} {
    %c0_i32 = arith.constant 0 : i32
    %0 = arith.cmpi eq, %arg1, %c0_i32 : i32
    %1 = arith.extui %0 : i1 to i32
    %c0_i32_0 = arith.constant 0 : i32
    %2 = arith.cmpi ne, %1, %c0_i32_0 : i32
    scf.if %2 {
      %c0_104 = arith.constant 0 : index
      %c0_105 = arith.constant 0 : index
      %302 = vector.load %arg8[%c0_104, %c0_105] : memref<32x128xf32, #tpu.memory_space<vmem>>, vector<32x128xf32>
      %c0_106 = arith.constant 0 : index
      %c0_107 = arith.constant 0 : index
      %303 = vector.load %arg14[%c0_106, %c0_107] : memref<32x128xf32, #tpu.memory_space<vmem>>, vector<32x128xf32>
      tpu.vector_store %arg14[%c0_106, %c0_107], %302 {strides = array<i32>} : memref<32x128xf32, #tpu.memory_space<vmem>>, vector<32x128xf32>,
      %c0_108 = arith.constant 0 : index
      %c0_109 = arith.constant 0 : index
      %304 = vector.load %arg9[%c0_108, %c0_109] : memref<32x128xf32, #tpu.memory_space<vmem>>, vector<32x128xf32>
      %c0_110 = arith.constant 0 : index
      %c0_111 = arith.constant 0 : index
      %305 = vector.load %arg15[%c0_110, %c0_111] : memref<32x128xf32, #tpu.memory_space<vmem>>, vector<32x128xf32>
      tpu.vector_store %arg15[%c0_110, %c0_111], %304 {strides = array<i32>} : memref<32x128xf32, #tpu.memory_space<vmem>>, vector<32x128xf32>,
      %c0_112 = arith.constant 0 : index
      %c0_113 = arith.constant 0 : index
      %306 = vector.load %arg10[%c0_112, %c0_113] : memref<32x128xf32, #tpu.memory_space<vmem>>, vector<32x128xf32>
      %c0_114 = arith.constant 0 : index
      %c0_115 = arith.constant 0 : index
      %307 = vector.load %arg16[%c0_114, %c0_115] : memref<32x128xf32, #tpu.memory_space<vmem>>, vector<32x128xf32>
      tpu.vector_store %arg16[%c0_114, %c0_115], %306 {strides = array<i32>} : memref<32x128xf32, #tpu.memory_space<vmem>>, vector<32x128xf32>,
    } else {
    }
    %c0 = arith.constant 0 : index
    %c0_1 = arith.constant 0 : index
    %c0_2 = arith.constant 0 : index
    %3 = vector.load %arg2[%c0, %c0_1, %c0_2] : memref<8x32x128xi8, #tpu.memory_space<vmem>>, vector<8x32x128xi8>
    %4 = arith.sitofp %3 : vector<8x32x128xi8> to vector<8x32x128xbf16>
    %5 = vector.shape_cast %4 : vector<8x32x128xbf16> to vector<256x128xbf16>
    %c0_3 = arith.constant 0 : index
    %c0_4 = arith.constant 0 : index
    %6 = vector.load %arg3[%c0_3, %c0_4] : memref<128x128xbf16, #tpu.memory_space<vmem>>, vector<128x128xbf16>
    %cst = arith.constant dense<0.000000e+00> : vector<256x128xf32>
    %7 = tpu.matmul %5, %6, %cst {dimension_numbers = #tpu.dot_dimension_numbers<[1], [0], [0], [1], [0, 0, 1, 1], [], []>} : vector<256x128xbf16>, vector<128x128xbf16>, vector<256x128xf32> -> vector<256x128xf32>
    %c0_5 = arith.constant 0 : index
    %c0_6 = arith.constant 0 : index
    %8 = vector.load %arg4[%c0_5, %c0_6] : memref<1x128xf32, #tpu.memory_space<vmem>>, vector<1x128xf32>
    %9 = vector.broadcast %8 : vector<1x128xf32> to vector<256x128xf32>
    %10 = arith.addf %7, %9 : vector<256x128xf32>
    %c0_7 = arith.constant 0 : index
    %c0_8 = arith.constant 0 : index
    %11 = vector.load %arg5[%c0_7, %c0_8] : memref<1x128xf32, #tpu.memory_space<vmem>>, vector<1x128xf32>
    %c0_9 = arith.constant 0 : index
    %c0_10 = arith.constant 0 : index
    %12 = vector.load %arg6[%c0_9, %c0_10] : memref<1x128xf32, #tpu.memory_space<vmem>>, vector<1x128xf32>
    %cst_11 = arith.constant 1.000000e+00 : f32
    %13 = vector.broadcast %cst_11 : f32 to vector<1x128xf32>
    %14 = arith.subf %13, %12 : vector<1x128xf32>
    %c0_12 = arith.constant 0 : index
    %c0_13 = arith.constant 0 : index
    %15 = vector.load %arg11[%c0_12, %c0_13] : memref<32x128xf32, #tpu.memory_space<vmem>>, vector<32x128xf32>
    %c0_14 = arith.constant 0 : index
    %c0_15 = arith.constant 0 : index
    %16 = vector.load %arg14[%c0_14, %c0_15] : memref<32x128xf32, #tpu.memory_space<vmem>>, vector<32x128xf32>
    %c0_16 = arith.constant 0 : index
    %c0_17 = arith.constant 0 : index
    %17 = vector.load %arg15[%c0_16, %c0_17] : memref<32x128xf32, #tpu.memory_space<vmem>>, vector<32x128xf32>
    %c0_18 = arith.constant 0 : index
    %c0_19 = arith.constant 0 : index
    %18 = vector.load %arg16[%c0_18, %c0_19] : memref<32x128xf32, #tpu.memory_space<vmem>>, vector<32x128xf32>
    %19 = vector.extract_strided_slice %10 {offsets = [0, 0], sizes = [32, 128], strides = [1, 1]} : vector<256x128xf32> to vector<32x128xf32>
    %20 = vector.broadcast %11 : vector<1x128xf32> to vector<32x128xf32>
    %21 = arith.mulf %20, %16 : vector<32x128xf32>
    %22 = arith.addf %21, %19 : vector<32x128xf32>
    %c96_i32 = arith.constant 96 : i32
    %23 = tpu.dynamic_rotate %22 by %c96_i32 dim 1 : vector<32x128xf32>, i32 -> vector<32x128xf32>
    %c64_i32 = arith.constant 64 : i32
    %24 = tpu.dynamic_rotate %22 by %c64_i32 dim 1 : vector<32x128xf32>, i32 -> vector<32x128xf32>
    %c32_i32 = arith.constant 32 : i32
    %25 = tpu.dynamic_rotate %22 by %c32_i32 dim 1 : vector<32x128xf32>, i32 -> vector<32x128xf32>
    %26 = arith.addf %22, %23 : vector<32x128xf32>
    %27 = arith.addf %24, %25 : vector<32x128xf32>
    %28 = arith.addf %26, %27 : vector<32x128xf32>
    %c0_20 = arith.constant 0 : index
    %c0_21 = arith.constant 0 : index
    %29 = vector.load %arg7[%c0_20, %c0_21] : memref<8x128xf32, #tpu.memory_space<vmem>>, vector<1x128xf32>
    %30 = vector.broadcast %12 : vector<1x128xf32> to vector<32x128xf32>
    %31 = arith.mulf %17, %30 : vector<32x128xf32>
    %32 = vector.broadcast %14 : vector<1x128xf32> to vector<32x128xf32>
    %33 = arith.mulf %32, %28 : vector<32x128xf32>
    %34 = arith.addf %31, %33 : vector<32x128xf32>
    %35 = arith.mulf %15, %18 : vector<32x128xf32>
    %36 = arith.subf %34, %35 : vector<32x128xf32>
    %37 = arith.subf %36, %17 : vector<32x128xf32>
    %38 = vector.broadcast %29 : vector<1x128xf32> to vector<32x128xf32>
    %39 = arith.mulf %38, %37 : vector<32x128xf32>
    %40 = arith.addf %17, %39 : vector<32x128xf32>
    %41 = arith.cmpf ogt, %40, %15 : vector<32x128xf32>
    %42 = arith.extui %41 : vector<32x128xi1> to vector<32x128xi32>
    %43 = arith.sitofp %42 : vector<32x128xi32> to vector<32x128xf32>
    %44 = vector.broadcast %29 : vector<1x128xf32> to vector<32x128xf32>
    %45 = arith.mulf %43, %44 : vector<32x128xf32>
    %46 = arith.truncf %40 : vector<32x128xf32> to vector<32x128xbf16>
    %c0_22 = arith.constant 0 : index
    %c0_23 = arith.constant 0 : index
    %c0_24 = arith.constant 0 : index
    %47 = vector.load %arg12[%c0_22, %c0_23, %c0_24] : memref<8x32x128xbf16, #tpu.memory_space<vmem>>, vector<1x32x128xbf16>
    %48 = vector.shape_cast %47 : vector<1x32x128xbf16> to vector<32x128xbf16>
    %49 = vector.shape_cast %46 : vector<32x128xbf16> to vector<1x32x128xbf16>
    tpu.vector_store %arg12[%c0_22, %c0_23, %c0_24], %49 {strides = array<i32>} : memref<8x32x128xbf16, #tpu.memory_space<vmem>>, vector<1x32x128xbf16>,
    %50 = arith.truncf %45 : vector<32x128xf32> to vector<32x128xbf16>
    %c0_25 = arith.constant 0 : index
    %c0_26 = arith.constant 0 : index
    %c0_27 = arith.constant 0 : index
    %51 = vector.load %arg13[%c0_25, %c0_26, %c0_27] : memref<8x32x128xbf16, #tpu.memory_space<vmem>>, vector<1x32x128xbf16>
    %52 = vector.shape_cast %51 : vector<1x32x128xbf16> to vector<32x128xbf16>
    %53 = vector.shape_cast %50 : vector<32x128xbf16> to vector<1x32x128xbf16>
    tpu.vector_store %arg13[%c0_25, %c0_26, %c0_27], %53 {strides = array<i32>} : memref<8x32x128xbf16, #tpu.memory_space<vmem>>, vector<1x32x128xbf16>,
    %54 = vector.extract_strided_slice %10 {offsets = [32, 0], sizes = [32, 128], strides = [1, 1]} : vector<256x128xf32> to vector<32x128xf32>
    %55 = vector.broadcast %11 : vector<1x128xf32> to vector<32x128xf32>
    %56 = arith.mulf %55, %22 : vector<32x128xf32>
    %57 = arith.addf %56, %54 : vector<32x128xf32>
    %c96_i32_28 = arith.constant 96 : i32
    %58 = tpu.dynamic_rotate %57 by %c96_i32_28 dim 1 : vector<32x128xf32>, i32 -> vector<32x128xf32>
    %c64_i32_29 = arith.constant 64 : i32
    %59 = tpu.dynamic_rotate %57 by %c64_i32_29 dim 1 : vector<32x128xf32>, i32 -> vector<32x128xf32>
    %c32_i32_30 = arith.constant 32 : i32
    %60 = tpu.dynamic_rotate %57 by %c32_i32_30 dim 1 : vector<32x128xf32>, i32 -> vector<32x128xf32>
    %61 = arith.addf %57, %58 : vector<32x128xf32>
    %62 = arith.addf %59, %60 : vector<32x128xf32>
    %63 = arith.addf %61, %62 : vector<32x128xf32>
    %c1 = arith.constant 1 : index
    %c0_31 = arith.constant 0 : index
    %64 = vector.load %arg7[%c1, %c0_31] : memref<8x128xf32, #tpu.memory_space<vmem>>, vector<1x128xf32>
    %65 = vector.broadcast %12 : vector<1x128xf32> to vector<32x128xf32>
    %66 = arith.mulf %40, %65 : vector<32x128xf32>
    %67 = vector.broadcast %14 : vector<1x128xf32> to vector<32x128xf32>
    %68 = arith.mulf %67, %63 : vector<32x128xf32>
    %69 = arith.addf %66, %68 : vector<32x128xf32>
    %70 = arith.mulf %15, %45 : vector<32x128xf32>
    %71 = arith.subf %69, %70 : vector<32x128xf32>
    %72 = arith.subf %71, %40 : vector<32x128xf32>
    %73 = vector.broadcast %64 : vector<1x128xf32> to vector<32x128xf32>
    %74 = arith.mulf %73, %72 : vector<32x128xf32>
    %75 = arith.addf %40, %74 : vector<32x128xf32>
    %76 = arith.cmpf ogt, %75, %15 : vector<32x128xf32>
    %77 = arith.extui %76 : vector<32x128xi1> to vector<32x128xi32>
    %78 = arith.sitofp %77 : vector<32x128xi32> to vector<32x128xf32>
    %79 = vector.broadcast %64 : vector<1x128xf32> to vector<32x128xf32>
    %80 = arith.mulf %78, %79 : vector<32x128xf32>
    %81 = arith.truncf %75 : vector<32x128xf32> to vector<32x128xbf16>
    %c1_32 = arith.constant 1 : index
    %c0_33 = arith.constant 0 : index
    %c0_34 = arith.constant 0 : index
    %82 = vector.load %arg12[%c1_32, %c0_33, %c0_34] : memref<8x32x128xbf16, #tpu.memory_space<vmem>>, vector<1x32x128xbf16>
    %83 = vector.shape_cast %82 : vector<1x32x128xbf16> to vector<32x128xbf16>
    %84 = vector.shape_cast %81 : vector<32x128xbf16> to vector<1x32x128xbf16>
    tpu.vector_store %arg12[%c1_32, %c0_33, %c0_34], %84 {strides = array<i32>} : memref<8x32x128xbf16, #tpu.memory_space<vmem>>, vector<1x32x128xbf16>,
    %85 = arith.truncf %80 : vector<32x128xf32> to vector<32x128xbf16>
    %c1_35 = arith.constant 1 : index
    %c0_36 = arith.constant 0 : index
    %c0_37 = arith.constant 0 : index
    %86 = vector.load %arg13[%c1_35, %c0_36, %c0_37] : memref<8x32x128xbf16, #tpu.memory_space<vmem>>, vector<1x32x128xbf16>
    %87 = vector.shape_cast %86 : vector<1x32x128xbf16> to vector<32x128xbf16>
    %88 = vector.shape_cast %85 : vector<32x128xbf16> to vector<1x32x128xbf16>
    tpu.vector_store %arg13[%c1_35, %c0_36, %c0_37], %88 {strides = array<i32>} : memref<8x32x128xbf16, #tpu.memory_space<vmem>>, vector<1x32x128xbf16>,
    %89 = vector.extract_strided_slice %10 {offsets = [64, 0], sizes = [32, 128], strides = [1, 1]} : vector<256x128xf32> to vector<32x128xf32>
    %90 = vector.broadcast %11 : vector<1x128xf32> to vector<32x128xf32>
    %91 = arith.mulf %90, %57 : vector<32x128xf32>
    %92 = arith.addf %91, %89 : vector<32x128xf32>
    %c96_i32_38 = arith.constant 96 : i32
    %93 = tpu.dynamic_rotate %92 by %c96_i32_38 dim 1 : vector<32x128xf32>, i32 -> vector<32x128xf32>
    %c64_i32_39 = arith.constant 64 : i32
    %94 = tpu.dynamic_rotate %92 by %c64_i32_39 dim 1 : vector<32x128xf32>, i32 -> vector<32x128xf32>
    %c32_i32_40 = arith.constant 32 : i32
    %95 = tpu.dynamic_rotate %92 by %c32_i32_40 dim 1 : vector<32x128xf32>, i32 -> vector<32x128xf32>
    %96 = arith.addf %92, %93 : vector<32x128xf32>
    %97 = arith.addf %94, %95 : vector<32x128xf32>
    %98 = arith.addf %96, %97 : vector<32x128xf32>
    %c2 = arith.constant 2 : index
    %c0_41 = arith.constant 0 : index
    %99 = vector.load %arg7[%c2, %c0_41] : memref<8x128xf32, #tpu.memory_space<vmem>>, vector<1x128xf32>
    %100 = vector.broadcast %12 : vector<1x128xf32> to vector<32x128xf32>
    %101 = arith.mulf %75, %100 : vector<32x128xf32>
    %102 = vector.broadcast %14 : vector<1x128xf32> to vector<32x128xf32>
    %103 = arith.mulf %102, %98 : vector<32x128xf32>
    %104 = arith.addf %101, %103 : vector<32x128xf32>
    %105 = arith.mulf %15, %80 : vector<32x128xf32>
    %106 = arith.subf %104, %105 : vector<32x128xf32>
    %107 = arith.subf %106, %75 : vector<32x128xf32>
    %108 = vector.broadcast %99 : vector<1x128xf32> to vector<32x128xf32>
    %109 = arith.mulf %108, %107 : vector<32x128xf32>
    %110 = arith.addf %75, %109 : vector<32x128xf32>
    %111 = arith.cmpf ogt, %110, %15 : vector<32x128xf32>
    %112 = arith.extui %111 : vector<32x128xi1> to vector<32x128xi32>
    %113 = arith.sitofp %112 : vector<32x128xi32> to vector<32x128xf32>
    %114 = vector.broadcast %99 : vector<1x128xf32> to vector<32x128xf32>
    %115 = arith.mulf %113, %114 : vector<32x128xf32>
    %116 = arith.truncf %110 : vector<32x128xf32> to vector<32x128xbf16>
    %c2_42 = arith.constant 2 : index
    %c0_43 = arith.constant 0 : index
    %c0_44 = arith.constant 0 : index
    %117 = vector.load %arg12[%c2_42, %c0_43, %c0_44] : memref<8x32x128xbf16, #tpu.memory_space<vmem>>, vector<1x32x128xbf16>
    %118 = vector.shape_cast %117 : vector<1x32x128xbf16> to vector<32x128xbf16>
    %119 = vector.shape_cast %116 : vector<32x128xbf16> to vector<1x32x128xbf16>
    tpu.vector_store %arg12[%c2_42, %c0_43, %c0_44], %119 {strides = array<i32>} : memref<8x32x128xbf16, #tpu.memory_space<vmem>>, vector<1x32x128xbf16>,
    %120 = arith.truncf %115 : vector<32x128xf32> to vector<32x128xbf16>
    %c2_45 = arith.constant 2 : index
    %c0_46 = arith.constant 0 : index
    %c0_47 = arith.constant 0 : index
    %121 = vector.load %arg13[%c2_45, %c0_46, %c0_47] : memref<8x32x128xbf16, #tpu.memory_space<vmem>>, vector<1x32x128xbf16>
    %122 = vector.shape_cast %121 : vector<1x32x128xbf16> to vector<32x128xbf16>
    %123 = vector.shape_cast %120 : vector<32x128xbf16> to vector<1x32x128xbf16>
    tpu.vector_store %arg13[%c2_45, %c0_46, %c0_47], %123 {strides = array<i32>} : memref<8x32x128xbf16, #tpu.memory_space<vmem>>, vector<1x32x128xbf16>,
    %124 = vector.extract_strided_slice %10 {offsets = [96, 0], sizes = [32, 128], strides = [1, 1]} : vector<256x128xf32> to vector<32x128xf32>
    %125 = vector.broadcast %11 : vector<1x128xf32> to vector<32x128xf32>
    %126 = arith.mulf %125, %92 : vector<32x128xf32>
    %127 = arith.addf %126, %124 : vector<32x128xf32>
    %c96_i32_48 = arith.constant 96 : i32
    %128 = tpu.dynamic_rotate %127 by %c96_i32_48 dim 1 : vector<32x128xf32>, i32 -> vector<32x128xf32>
    %c64_i32_49 = arith.constant 64 : i32
    %129 = tpu.dynamic_rotate %127 by %c64_i32_49 dim 1 : vector<32x128xf32>, i32 -> vector<32x128xf32>
    %c32_i32_50 = arith.constant 32 : i32
    %130 = tpu.dynamic_rotate %127 by %c32_i32_50 dim 1 : vector<32x128xf32>, i32 -> vector<32x128xf32>
    %131 = arith.addf %127, %128 : vector<32x128xf32>
    %132 = arith.addf %129, %130 : vector<32x128xf32>
    %133 = arith.addf %131, %132 : vector<32x128xf32>
    %c3 = arith.constant 3 : index
    %c0_51 = arith.constant 0 : index
    %134 = vector.load %arg7[%c3, %c0_51] : memref<8x128xf32, #tpu.memory_space<vmem>>, vector<1x128xf32>
    %135 = vector.broadcast %12 : vector<1x128xf32> to vector<32x128xf32>
    %136 = arith.mulf %110, %135 : vector<32x128xf32>
    %137 = vector.broadcast %14 : vector<1x128xf32> to vector<32x128xf32>
    %138 = arith.mulf %137, %133 : vector<32x128xf32>
    %139 = arith.addf %136, %138 : vector<32x128xf32>
    %140 = arith.mulf %15, %115 : vector<32x128xf32>
    %141 = arith.subf %139, %140 : vector<32x128xf32>
    %142 = arith.subf %141, %110 : vector<32x128xf32>
    %143 = vector.broadcast %134 : vector<1x128xf32> to vector<32x128xf32>
    %144 = arith.mulf %143, %142 : vector<32x128xf32>
    %145 = arith.addf %110, %144 : vector<32x128xf32>
    %146 = arith.cmpf ogt, %145, %15 : vector<32x128xf32>
    %147 = arith.extui %146 : vector<32x128xi1> to vector<32x128xi32>
    %148 = arith.sitofp %147 : vector<32x128xi32> to vector<32x128xf32>
    %149 = vector.broadcast %134 : vector<1x128xf32> to vector<32x128xf32>
    %150 = arith.mulf %148, %149 : vector<32x128xf32>
    %151 = arith.truncf %145 : vector<32x128xf32> to vector<32x128xbf16>
    %c3_52 = arith.constant 3 : index
    %c0_53 = arith.constant 0 : index
    %c0_54 = arith.constant 0 : index
    %152 = vector.load %arg12[%c3_52, %c0_53, %c0_54] : memref<8x32x128xbf16, #tpu.memory_space<vmem>>, vector<1x32x128xbf16>
    %153 = vector.shape_cast %152 : vector<1x32x128xbf16> to vector<32x128xbf16>
    %154 = vector.shape_cast %151 : vector<32x128xbf16> to vector<1x32x128xbf16>
    tpu.vector_store %arg12[%c3_52, %c0_53, %c0_54], %154 {strides = array<i32>} : memref<8x32x128xbf16, #tpu.memory_space<vmem>>, vector<1x32x128xbf16>,
    %155 = arith.truncf %150 : vector<32x128xf32> to vector<32x128xbf16>
    %c3_55 = arith.constant 3 : index
    %c0_56 = arith.constant 0 : index
    %c0_57 = arith.constant 0 : index
    %156 = vector.load %arg13[%c3_55, %c0_56, %c0_57] : memref<8x32x128xbf16, #tpu.memory_space<vmem>>, vector<1x32x128xbf16>
    %157 = vector.shape_cast %156 : vector<1x32x128xbf16> to vector<32x128xbf16>
    %158 = vector.shape_cast %155 : vector<32x128xbf16> to vector<1x32x128xbf16>
    tpu.vector_store %arg13[%c3_55, %c0_56, %c0_57], %158 {strides = array<i32>} : memref<8x32x128xbf16, #tpu.memory_space<vmem>>, vector<1x32x128xbf16>,
    %159 = vector.extract_strided_slice %10 {offsets = [128, 0], sizes = [32, 128], strides = [1, 1]} : vector<256x128xf32> to vector<32x128xf32>
    %160 = vector.broadcast %11 : vector<1x128xf32> to vector<32x128xf32>
    %161 = arith.mulf %160, %127 : vector<32x128xf32>
    %162 = arith.addf %161, %159 : vector<32x128xf32>
    %c96_i32_58 = arith.constant 96 : i32
    %163 = tpu.dynamic_rotate %162 by %c96_i32_58 dim 1 : vector<32x128xf32>, i32 -> vector<32x128xf32>
    %c64_i32_59 = arith.constant 64 : i32
    %164 = tpu.dynamic_rotate %162 by %c64_i32_59 dim 1 : vector<32x128xf32>, i32 -> vector<32x128xf32>
    %c32_i32_60 = arith.constant 32 : i32
    %165 = tpu.dynamic_rotate %162 by %c32_i32_60 dim 1 : vector<32x128xf32>, i32 -> vector<32x128xf32>
    %166 = arith.addf %162, %163 : vector<32x128xf32>
    %167 = arith.addf %164, %165 : vector<32x128xf32>
    %168 = arith.addf %166, %167 : vector<32x128xf32>
    %c4 = arith.constant 4 : index
    %c0_61 = arith.constant 0 : index
    %169 = vector.load %arg7[%c4, %c0_61] : memref<8x128xf32, #tpu.memory_space<vmem>>, vector<1x128xf32>
    %170 = vector.broadcast %12 : vector<1x128xf32> to vector<32x128xf32>
    %171 = arith.mulf %145, %170 : vector<32x128xf32>
    %172 = vector.broadcast %14 : vector<1x128xf32> to vector<32x128xf32>
    %173 = arith.mulf %172, %168 : vector<32x128xf32>
    %174 = arith.addf %171, %173 : vector<32x128xf32>
    %175 = arith.mulf %15, %150 : vector<32x128xf32>
    %176 = arith.subf %174, %175 : vector<32x128xf32>
    %177 = arith.subf %176, %145 : vector<32x128xf32>
    %178 = vector.broadcast %169 : vector<1x128xf32> to vector<32x128xf32>
    %179 = arith.mulf %178, %177 : vector<32x128xf32>
    %180 = arith.addf %145, %179 : vector<32x128xf32>
    %181 = arith.cmpf ogt, %180, %15 : vector<32x128xf32>
    %182 = arith.extui %181 : vector<32x128xi1> to vector<32x128xi32>
    %183 = arith.sitofp %182 : vector<32x128xi32> to vector<32x128xf32>
    %184 = vector.broadcast %169 : vector<1x128xf32> to vector<32x128xf32>
    %185 = arith.mulf %183, %184 : vector<32x128xf32>
    %186 = arith.truncf %180 : vector<32x128xf32> to vector<32x128xbf16>
    %c4_62 = arith.constant 4 : index
    %c0_63 = arith.constant 0 : index
    %c0_64 = arith.constant 0 : index
    %187 = vector.load %arg12[%c4_62, %c0_63, %c0_64] : memref<8x32x128xbf16, #tpu.memory_space<vmem>>, vector<1x32x128xbf16>
    %188 = vector.shape_cast %187 : vector<1x32x128xbf16> to vector<32x128xbf16>
    %189 = vector.shape_cast %186 : vector<32x128xbf16> to vector<1x32x128xbf16>
    tpu.vector_store %arg12[%c4_62, %c0_63, %c0_64], %189 {strides = array<i32>} : memref<8x32x128xbf16, #tpu.memory_space<vmem>>, vector<1x32x128xbf16>,
    %190 = arith.truncf %185 : vector<32x128xf32> to vector<32x128xbf16>
    %c4_65 = arith.constant 4 : index
    %c0_66 = arith.constant 0 : index
    %c0_67 = arith.constant 0 : index
    %191 = vector.load %arg13[%c4_65, %c0_66, %c0_67] : memref<8x32x128xbf16, #tpu.memory_space<vmem>>, vector<1x32x128xbf16>
    %192 = vector.shape_cast %191 : vector<1x32x128xbf16> to vector<32x128xbf16>
    %193 = vector.shape_cast %190 : vector<32x128xbf16> to vector<1x32x128xbf16>
    tpu.vector_store %arg13[%c4_65, %c0_66, %c0_67], %193 {strides = array<i32>} : memref<8x32x128xbf16, #tpu.memory_space<vmem>>, vector<1x32x128xbf16>,
    %194 = vector.extract_strided_slice %10 {offsets = [160, 0], sizes = [32, 128], strides = [1, 1]} : vector<256x128xf32> to vector<32x128xf32>
    %195 = vector.broadcast %11 : vector<1x128xf32> to vector<32x128xf32>
    %196 = arith.mulf %195, %162 : vector<32x128xf32>
    %197 = arith.addf %196, %194 : vector<32x128xf32>
    %c96_i32_68 = arith.constant 96 : i32
    %198 = tpu.dynamic_rotate %197 by %c96_i32_68 dim 1 : vector<32x128xf32>, i32 -> vector<32x128xf32>
    %c64_i32_69 = arith.constant 64 : i32
    %199 = tpu.dynamic_rotate %197 by %c64_i32_69 dim 1 : vector<32x128xf32>, i32 -> vector<32x128xf32>
    %c32_i32_70 = arith.constant 32 : i32
    %200 = tpu.dynamic_rotate %197 by %c32_i32_70 dim 1 : vector<32x128xf32>, i32 -> vector<32x128xf32>
    %201 = arith.addf %197, %198 : vector<32x128xf32>
    %202 = arith.addf %199, %200 : vector<32x128xf32>
    %203 = arith.addf %201, %202 : vector<32x128xf32>
    %c5 = arith.constant 5 : index
    %c0_71 = arith.constant 0 : index
    %204 = vector.load %arg7[%c5, %c0_71] : memref<8x128xf32, #tpu.memory_space<vmem>>, vector<1x128xf32>
    %205 = vector.broadcast %12 : vector<1x128xf32> to vector<32x128xf32>
    %206 = arith.mulf %180, %205 : vector<32x128xf32>
    %207 = vector.broadcast %14 : vector<1x128xf32> to vector<32x128xf32>
    %208 = arith.mulf %207, %203 : vector<32x128xf32>
    %209 = arith.addf %206, %208 : vector<32x128xf32>
    %210 = arith.mulf %15, %185 : vector<32x128xf32>
    %211 = arith.subf %209, %210 : vector<32x128xf32>
    %212 = arith.subf %211, %180 : vector<32x128xf32>
    %213 = vector.broadcast %204 : vector<1x128xf32> to vector<32x128xf32>
    %214 = arith.mulf %213, %212 : vector<32x128xf32>
    %215 = arith.addf %180, %214 : vector<32x128xf32>
    %216 = arith.cmpf ogt, %215, %15 : vector<32x128xf32>
    %217 = arith.extui %216 : vector<32x128xi1> to vector<32x128xi32>
    %218 = arith.sitofp %217 : vector<32x128xi32> to vector<32x128xf32>
    %219 = vector.broadcast %204 : vector<1x128xf32> to vector<32x128xf32>
    %220 = arith.mulf %218, %219 : vector<32x128xf32>
    %221 = arith.truncf %215 : vector<32x128xf32> to vector<32x128xbf16>
    %c5_72 = arith.constant 5 : index
    %c0_73 = arith.constant 0 : index
    %c0_74 = arith.constant 0 : index
    %222 = vector.load %arg12[%c5_72, %c0_73, %c0_74] : memref<8x32x128xbf16, #tpu.memory_space<vmem>>, vector<1x32x128xbf16>
    %223 = vector.shape_cast %222 : vector<1x32x128xbf16> to vector<32x128xbf16>
    %224 = vector.shape_cast %221 : vector<32x128xbf16> to vector<1x32x128xbf16>
    tpu.vector_store %arg12[%c5_72, %c0_73, %c0_74], %224 {strides = array<i32>} : memref<8x32x128xbf16, #tpu.memory_space<vmem>>, vector<1x32x128xbf16>,
    %225 = arith.truncf %220 : vector<32x128xf32> to vector<32x128xbf16>
    %c5_75 = arith.constant 5 : index
    %c0_76 = arith.constant 0 : index
    %c0_77 = arith.constant 0 : index
    %226 = vector.load %arg13[%c5_75, %c0_76, %c0_77] : memref<8x32x128xbf16, #tpu.memory_space<vmem>>, vector<1x32x128xbf16>
    %227 = vector.shape_cast %226 : vector<1x32x128xbf16> to vector<32x128xbf16>
    %228 = vector.shape_cast %225 : vector<32x128xbf16> to vector<1x32x128xbf16>
    tpu.vector_store %arg13[%c5_75, %c0_76, %c0_77], %228 {strides = array<i32>} : memref<8x32x128xbf16, #tpu.memory_space<vmem>>, vector<1x32x128xbf16>,
    %229 = vector.extract_strided_slice %10 {offsets = [192, 0], sizes = [32, 128], strides = [1, 1]} : vector<256x128xf32> to vector<32x128xf32>
    %230 = vector.broadcast %11 : vector<1x128xf32> to vector<32x128xf32>
    %231 = arith.mulf %230, %197 : vector<32x128xf32>
    %232 = arith.addf %231, %229 : vector<32x128xf32>
    %c96_i32_78 = arith.constant 96 : i32
    %233 = tpu.dynamic_rotate %232 by %c96_i32_78 dim 1 : vector<32x128xf32>, i32 -> vector<32x128xf32>
    %c64_i32_79 = arith.constant 64 : i32
    %234 = tpu.dynamic_rotate %232 by %c64_i32_79 dim 1 : vector<32x128xf32>, i32 -> vector<32x128xf32>
    %c32_i32_80 = arith.constant 32 : i32
    %235 = tpu.dynamic_rotate %232 by %c32_i32_80 dim 1 : vector<32x128xf32>, i32 -> vector<32x128xf32>
    %236 = arith.addf %232, %233 : vector<32x128xf32>
    %237 = arith.addf %234, %235 : vector<32x128xf32>
    %238 = arith.addf %236, %237 : vector<32x128xf32>
    %c6 = arith.constant 6 : index
    %c0_81 = arith.constant 0 : index
    %239 = vector.load %arg7[%c6, %c0_81] : memref<8x128xf32, #tpu.memory_space<vmem>>, vector<1x128xf32>
    %240 = vector.broadcast %12 : vector<1x128xf32> to vector<32x128xf32>
    %241 = arith.mulf %215, %240 : vector<32x128xf32>
    %242 = vector.broadcast %14 : vector<1x128xf32> to vector<32x128xf32>
    %243 = arith.mulf %242, %238 : vector<32x128xf32>
    %244 = arith.addf %241, %243 : vector<32x128xf32>
    %245 = arith.mulf %15, %220 : vector<32x128xf32>
    %246 = arith.subf %244, %245 : vector<32x128xf32>
    %247 = arith.subf %246, %215 : vector<32x128xf32>
    %248 = vector.broadcast %239 : vector<1x128xf32> to vector<32x128xf32>
    %249 = arith.mulf %248, %247 : vector<32x128xf32>
    %250 = arith.addf %215, %249 : vector<32x128xf32>
    %251 = arith.cmpf ogt, %250, %15 : vector<32x128xf32>
    %252 = arith.extui %251 : vector<32x128xi1> to vector<32x128xi32>
    %253 = arith.sitofp %252 : vector<32x128xi32> to vector<32x128xf32>
    %254 = vector.broadcast %239 : vector<1x128xf32> to vector<32x128xf32>
    %255 = arith.mulf %253, %254 : vector<32x128xf32>
    %256 = arith.truncf %250 : vector<32x128xf32> to vector<32x128xbf16>
    %c6_82 = arith.constant 6 : index
    %c0_83 = arith.constant 0 : index
    %c0_84 = arith.constant 0 : index
    %257 = vector.load %arg12[%c6_82, %c0_83, %c0_84] : memref<8x32x128xbf16, #tpu.memory_space<vmem>>, vector<1x32x128xbf16>
    %258 = vector.shape_cast %257 : vector<1x32x128xbf16> to vector<32x128xbf16>
    %259 = vector.shape_cast %256 : vector<32x128xbf16> to vector<1x32x128xbf16>
    tpu.vector_store %arg12[%c6_82, %c0_83, %c0_84], %259 {strides = array<i32>} : memref<8x32x128xbf16, #tpu.memory_space<vmem>>, vector<1x32x128xbf16>,
    %260 = arith.truncf %255 : vector<32x128xf32> to vector<32x128xbf16>
    %c6_85 = arith.constant 6 : index
    %c0_86 = arith.constant 0 : index
    %c0_87 = arith.constant 0 : index
    %261 = vector.load %arg13[%c6_85, %c0_86, %c0_87] : memref<8x32x128xbf16, #tpu.memory_space<vmem>>, vector<1x32x128xbf16>
    %262 = vector.shape_cast %261 : vector<1x32x128xbf16> to vector<32x128xbf16>
    %263 = vector.shape_cast %260 : vector<32x128xbf16> to vector<1x32x128xbf16>
    tpu.vector_store %arg13[%c6_85, %c0_86, %c0_87], %263 {strides = array<i32>} : memref<8x32x128xbf16, #tpu.memory_space<vmem>>, vector<1x32x128xbf16>,
    %264 = vector.extract_strided_slice %10 {offsets = [224, 0], sizes = [32, 128], strides = [1, 1]} : vector<256x128xf32> to vector<32x128xf32>
    %265 = vector.broadcast %11 : vector<1x128xf32> to vector<32x128xf32>
    %266 = arith.mulf %265, %232 : vector<32x128xf32>
    %267 = arith.addf %266, %264 : vector<32x128xf32>
    %c96_i32_88 = arith.constant 96 : i32
    %268 = tpu.dynamic_rotate %267 by %c96_i32_88 dim 1 : vector<32x128xf32>, i32 -> vector<32x128xf32>
    %c64_i32_89 = arith.constant 64 : i32
    %269 = tpu.dynamic_rotate %267 by %c64_i32_89 dim 1 : vector<32x128xf32>, i32 -> vector<32x128xf32>
    %c32_i32_90 = arith.constant 32 : i32
    %270 = tpu.dynamic_rotate %267 by %c32_i32_90 dim 1 : vector<32x128xf32>, i32 -> vector<32x128xf32>
    %271 = arith.addf %267, %268 : vector<32x128xf32>
    %272 = arith.addf %269, %270 : vector<32x128xf32>
    %273 = arith.addf %271, %272 : vector<32x128xf32>
    %c7 = arith.constant 7 : index
    %c0_91 = arith.constant 0 : index
    %274 = vector.load %arg7[%c7, %c0_91] : memref<8x128xf32, #tpu.memory_space<vmem>>, vector<1x128xf32>
    %275 = vector.broadcast %12 : vector<1x128xf32> to vector<32x128xf32>
    %276 = arith.mulf %250, %275 : vector<32x128xf32>
    %277 = vector.broadcast %14 : vector<1x128xf32> to vector<32x128xf32>
    %278 = arith.mulf %277, %273 : vector<32x128xf32>
    %279 = arith.addf %276, %278 : vector<32x128xf32>
    %280 = arith.mulf %15, %255 : vector<32x128xf32>
    %281 = arith.subf %279, %280 : vector<32x128xf32>
    %282 = arith.subf %281, %250 : vector<32x128xf32>
    %283 = vector.broadcast %274 : vector<1x128xf32> to vector<32x128xf32>
    %284 = arith.mulf %283, %282 : vector<32x128xf32>
    %285 = arith.addf %250, %284 : vector<32x128xf32>
    %286 = arith.cmpf ogt, %285, %15 : vector<32x128xf32>
    %287 = arith.extui %286 : vector<32x128xi1> to vector<32x128xi32>
    %288 = arith.sitofp %287 : vector<32x128xi32> to vector<32x128xf32>
    %289 = vector.broadcast %274 : vector<1x128xf32> to vector<32x128xf32>
    %290 = arith.mulf %288, %289 : vector<32x128xf32>
    %291 = arith.truncf %285 : vector<32x128xf32> to vector<32x128xbf16>
    %c7_92 = arith.constant 7 : index
    %c0_93 = arith.constant 0 : index
    %c0_94 = arith.constant 0 : index
    %292 = vector.load %arg12[%c7_92, %c0_93, %c0_94] : memref<8x32x128xbf16, #tpu.memory_space<vmem>>, vector<1x32x128xbf16>
    %293 = vector.shape_cast %292 : vector<1x32x128xbf16> to vector<32x128xbf16>
    %294 = vector.shape_cast %291 : vector<32x128xbf16> to vector<1x32x128xbf16>
    tpu.vector_store %arg12[%c7_92, %c0_93, %c0_94], %294 {strides = array<i32>} : memref<8x32x128xbf16, #tpu.memory_space<vmem>>, vector<1x32x128xbf16>,
    %295 = arith.truncf %290 : vector<32x128xf32> to vector<32x128xbf16>
    %c7_95 = arith.constant 7 : index
    %c0_96 = arith.constant 0 : index
    %c0_97 = arith.constant 0 : index
    %296 = vector.load %arg13[%c7_95, %c0_96, %c0_97] : memref<8x32x128xbf16, #tpu.memory_space<vmem>>, vector<1x32x128xbf16>
    %297 = vector.shape_cast %296 : vector<1x32x128xbf16> to vector<32x128xbf16>
    %298 = vector.shape_cast %295 : vector<32x128xbf16> to vector<1x32x128xbf16>
    tpu.vector_store %arg13[%c7_95, %c0_96, %c0_97], %298 {strides = array<i32>} : memref<8x32x128xbf16, #tpu.memory_space<vmem>>, vector<1x32x128xbf16>,
    %c0_98 = arith.constant 0 : index
    %c0_99 = arith.constant 0 : index
    %299 = vector.load %arg14[%c0_98, %c0_99] : memref<32x128xf32, #tpu.memory_space<vmem>>, vector<32x128xf32>
    tpu.vector_store %arg14[%c0_98, %c0_99], %267 {strides = array<i32>} : memref<32x128xf32, #tpu.memory_space<vmem>>, vector<32x128xf32>,
    %c0_100 = arith.constant 0 : index
    %c0_101 = arith.constant 0 : index
    %300 = vector.load %arg15[%c0_100, %c0_101] : memref<32x128xf32, #tpu.memory_space<vmem>>, vector<32x128xf32>
    tpu.vector_store %arg15[%c0_100, %c0_101], %285 {strides = array<i32>} : memref<32x128xf32, #tpu.memory_space<vmem>>, vector<32x128xf32>,
    %c0_102 = arith.constant 0 : index
    %c0_103 = arith.constant 0 : index
    %301 = vector.load %arg16[%c0_102, %c0_103] : memref<32x128xf32, #tpu.memory_space<vmem>>, vector<32x128xf32>
    tpu.vector_store %arg16[%c0_102, %c0_103], %290 {strides = array<i32>} : memref<32x128xf32, #tpu.memory_space<vmem>>, vector<32x128xf32>,
    return
  }
  func.func @transform_0(%arg0: i32, %arg1: i32) -> (i32, i32, i32) {
    %c0_i32 = arith.constant 0 : i32
    %c0_i32_0 = arith.constant 0 : i32
    return %arg1, %arg0, %c0_i32 : i32, i32, i32
  }
  func.func @transform_1(%arg0: i32, %arg1: i32) -> (i32, i32) {
    %c0_i32 = arith.constant 0 : i32
    %c0_i32_0 = arith.constant 0 : i32
    %c0_i32_1 = arith.constant 0 : i32
    return %c0_i32, %c0_i32_0 : i32, i32
  }
  func.func @transform_2(%arg0: i32, %arg1: i32) -> (i32, i32) {
    %c0_i32 = arith.constant 0 : i32
    %c0_i32_0 = arith.constant 0 : i32
    %c0_i32_1 = arith.constant 0 : i32
    return %c0_i32, %c0_i32_0 : i32, i32
  }
  func.func @transform_3(%arg0: i32, %arg1: i32) -> (i32, i32) {
    %c0_i32 = arith.constant 0 : i32
    %c0_i32_0 = arith.constant 0 : i32
    %c0_i32_1 = arith.constant 0 : i32
    return %c0_i32, %c0_i32_0 : i32, i32
  }
  func.func @transform_4(%arg0: i32, %arg1: i32) -> (i32, i32) {
    %c0_i32 = arith.constant 0 : i32
    %c0_i32_0 = arith.constant 0 : i32
    %c0_i32_1 = arith.constant 0 : i32
    return %c0_i32, %c0_i32_0 : i32, i32
  }
  func.func @transform_5(%arg0: i32, %arg1: i32) -> (i32, i32) {
    %c0_i32 = arith.constant 0 : i32
    %c0_i32_0 = arith.constant 0 : i32
    return %arg1, %c0_i32 : i32, i32
  }
  func.func @transform_6(%arg0: i32, %arg1: i32) -> (i32, i32) {
    %c0_i32 = arith.constant 0 : i32
    %c0_i32_0 = arith.constant 0 : i32
    return %arg0, %c0_i32 : i32, i32
  }
  func.func @transform_7(%arg0: i32, %arg1: i32) -> (i32, i32) {
    %c0_i32 = arith.constant 0 : i32
    %c0_i32_0 = arith.constant 0 : i32
    return %arg0, %c0_i32 : i32, i32
  }
  func.func @transform_8(%arg0: i32, %arg1: i32) -> (i32, i32) {
    %c0_i32 = arith.constant 0 : i32
    %c0_i32_0 = arith.constant 0 : i32
    return %arg0, %c0_i32 : i32, i32
  }
  func.func @transform_9(%arg0: i32, %arg1: i32) -> (i32, i32) {
    %c0_i32 = arith.constant 0 : i32
    %c0_i32_0 = arith.constant 0 : i32
    return %arg0, %c0_i32 : i32, i32
  }
  func.func @transform_10(%arg0: i32, %arg1: i32) -> (i32, i32, i32) {
    %c0_i32 = arith.constant 0 : i32
    %c0_i32_0 = arith.constant 0 : i32
    return %arg1, %arg0, %c0_i32 : i32, i32, i32
  }
  func.func @transform_11(%arg0: i32, %arg1: i32) -> (i32, i32, i32) {
    %c0_i32 = arith.constant 0 : i32
    %c0_i32_0 = arith.constant 0 : i32
    return %arg1, %arg0, %c0_i32 : i32, i32, i32
  }
  func.func @transform_12(%arg0: i32, %arg1: i32) -> (i32, i32) {
    %c0_i32 = arith.constant 0 : i32
    %c0_i32_0 = arith.constant 0 : i32
    return %arg0, %c0_i32 : i32, i32
  }
}

</mosaic_0001>

<bundles_post_ra>
// kernel: _lambda_.1
= control target key start
LH: loop header
LB: loop body
LE: loop exit
PB: predicated region body
PF: predicated region fallthrough
CT: control target
= control target key end

     0   :  { %18 = vsyncpa [#allocation5], 0  ;;  %s3566_s0 = inlined_call_operand.hbm [shape: s8[8,32,128], index: 0, kind: input, shape index: {}]   ;;  %s3567_s1 = inlined_call_operand.hbm [shape: bf16[128,128], index: 1, kind: input, shape index: {}]   ;;  %s3568_s2 = inlined_call_operand.hbm [shape: f32[1,128], index: 2, kind: input, shape index: {}]   ;;  %s3569_s3 = inlined_call_operand.hbm [shape: f32[1,128], index: 3, kind: input, shape index: {}]   ;;  %s3570_s4 = inlined_call_operand.hbm [shape: f32[1,128], index: 4, kind: input, shape index: {}]   ;;  %s3571_s5 = inlined_call_operand.hbm [shape: f32[8,128], index: 5, kind: input, shape index: {}]   ;;  %s3572_s6 = inlined_call_operand.hbm [shape: f32[32,128], index: 6, kind: input, shape index: {}, may-alias: {6,12}]   ;;  %s3573_s7 = inlined_call_operand.hbm [shape: f32[32,128], index: 7, kind: input, shape index: {}]   ;;  %s3574_s8 = inlined_call_operand.hbm [shape: f32[32,128], index: 8, kind: input, shape index: {}]   ;;  %s3575_s9 = inlined_call_operand.hbm [shape: f32[32,128], index: 9, kind: input, shape index: {}]   ;;  %s3576_s10 = inlined_call_operand.hbm [shape: bf16[8,32,128], index: 10, kind: output, shape index: {0}]   ;;  %s3577_s11 = inlined_call_operand.hbm [shape: bf16[8,32,128], index: 11, kind: output, shape index: {1}]   ;;  %s3578_s12 = inlined_call_operand.hbm [shape: f32[32,128], index: 12, kind: output, shape index: {2}, may-alias: {6,12}]  }
   0x1   :  { %19 = vsyncpa [#allocation8], 0 }
   0x2   :  { %20 = vsyncpa [#allocation11], 0 }
   0x3   :  { %21 = vsyncpa [#allocation14], 0 }
   0x4   :  { %22 = vsyncpa [#allocation17], 0 }
   0x5   :  { %23 = vsyncpa [#allocation20], 0 }
   0x6   :  { %24 = vsyncpa [#allocation6], 0 }
   0x7   :  { %25 = vsyncpa [#allocation23], 0  ;;  %s2445_s21 = smov [#allocation7]   ;;  %s2143_s25 = scalar_lea.hbm %s3567_s1, 1024 }
   0x8   :  { %s43_s22 = sshll.u32 %s2445_s21, 4  ;;  %p2144_p0 = scmp.ne.s32.totalorder %s3567_s1, %s2143_s25  ;;  %s44_s22 = int_to_ptr.vmem [resolvable:$true] %s43_s22 }
   0x9   :  { %p2147_p1 = scmp.lt.u32.totalorder %s2143_s25, %s3567_s1 }
   0xb   :  { %p2149_p2 = pnand %p2147_p1, %p2144_p0 }
   0xd   :  { %2152 = shalt.err (!%p2149_p2)
}
   0xe   :  { %s2153_s30 = scalar_lea.vmem %s44_s22, 1024  ;;  %p2158_p4 = scmp.lt.s32.totalorder %s44_s22, %s44_s22 }
   0xf   :  { %p2154_p3 = scmp.ne.s32.totalorder %s44_s22, %s2153_s30  ;;  %p2159_p5 = scmp.lt.s32.totalorder %s2153_s30, %s2153_s30 }
  0x11   :  { %p2160_p6 = por %p2159_p5, %p2158_p4 }
  0x13   :  { %p2161_p7 = pnand %p2160_p6, %p2154_p3 }
  0x15   :  { %2164 = shalt.err (!%p2161_p7)
}
  0x16   :  { %s2446_s13 = smov 64   ;;  %s2447_s14 = smov 4  }
  0x17   :  { %49 = dma.hbm_to_vmem [thread:$0]  %s3567_s1, 1024, %s44_s22, [#allocation8], %s2446_s13, %s2446_s13, %s2447_s14  }
  0x18   :  { %s2448_s17 = smov [#allocation10]   ;;  %s2449_s19 = smov [#allocation13]  }
  0x19   :  { %s66_s18 = sshll.u32 %s2448_s17, 4  ;;  %s86_s20 = sshll.u32 %s2449_s19, 4  ;;  %s67_s18 = int_to_ptr.vmem [resolvable:$true] %s66_s18  ;;  %s87_s20 = int_to_ptr.vmem [resolvable:$true] %s86_s20 }
  0x1a   :  { %s2165_s24 = scalar_lea.hbm %s3569_s3, 16 }
  0x1b   :  { %p2166_p8 = scmp.ne.s32.totalorder %s3569_s3, %s2165_s24  ;;  %p2169_p9 = scmp.lt.u32.totalorder %s2165_s24, %s3569_s3 }
  0x1d   :  { %p2171_p10 = pnand %p2169_p9, %p2166_p8 }
  0x1f   :  { %2174 = shalt.err (!%p2171_p10)
}
  0x20   :  { %s2175_s1 = scalar_lea.vmem %s67_s18, 16  ;;  %s2179_s22 = scalar_lea.vmem %s67_s18, 32 }
  0x21   :  { %p2176_p11 = scmp.ne.s32.totalorder %s67_s18, %s2175_s1  ;;  %p2180_p12 = scmp.lt.s32.totalorder %s67_s18, %s67_s18 }
  0x22   :  { %p2181_p13 = scmp.lt.s32.totalorder %s2179_s22, %s2175_s1 }
  0x24   :  { %p2182_p0 = por %p2181_p13, %p2180_p12 }
  0x26   :  { %p2183_p1 = pnand %p2182_p0, %p2176_p11 }
  0x28   :  { %2186 = shalt.err (!%p2183_p1)
}
  0x29   :  { %69 = dma.hbm_to_vmem [thread:$0]  %s3569_s3, 16, %s67_s18, [#allocation11]  }
  0x2a   :  { %s2187_s17 = scalar_lea.hbm %s3571_s5, 128 }
  0x2b   :  { %p2188_p2 = scmp.ne.s32.totalorder %s3571_s5, %s2187_s17  ;;  %p2191_p3 = scmp.lt.u32.totalorder %s2187_s17, %s3571_s5 }
  0x2d   :  { %p2193_p4 = pnand %p2191_p3, %p2188_p2 }
  0x2f   :  { %2196 = shalt.err (!%p2193_p4)
}
  0x30   :  { %s2197_s25 = scalar_lea.vmem %s87_s20, 128  ;;  %p2202_p6 = scmp.lt.s32.totalorder %s87_s20, %s87_s20 }
  0x31   :  { %p2198_p5 = scmp.ne.s32.totalorder %s87_s20, %s2197_s25  ;;  %p2203_p7 = scmp.lt.s32.totalorder %s2197_s25, %s2197_s25 }
  0x33   :  { %p2204_p8 = por %p2203_p7, %p2202_p6 }
  0x35   :  { %p2205_p9 = pnand %p2204_p8, %p2198_p5 }
  0x37   :  { %2208 = shalt.err (!%p2205_p9)
}
  0x38   :  { %89 = dma.hbm_to_vmem [thread:$0]  %s3571_s5, 128, %s87_s20, [#allocation14]  }
  0x39   :  { %s2450_s26 = smov [#allocation16]   ;;  %s2451_s28 = smov [#allocation4]  }
  0x3a   :  { %s107_s27 = sshll.u32 %s2450_s26, 4  ;;  %s31_s1 = sshll.u32 %s2451_s28, 4  ;;  %s108_s27 = int_to_ptr.vmem [resolvable:$true] %s107_s27  ;;  %s32_s1 = int_to_ptr.vmem [resolvable:$true] %s31_s1 }
  0x3b   :  { %s2209_s30 = scalar_lea.hbm %s3573_s7, 512 }
  0x3c   :  { %p2210_p10 = scmp.ne.s32.totalorder %s3573_s7, %s2209_s30  ;;  %p2213_p11 = scmp.lt.u32.totalorder %s2209_s30, %s3573_s7 }
  0x3e   :  { %p2215_p12 = pnand %p2213_p11, %p2210_p10 }
  0x40   :  { %2218 = shalt.err (!%p2215_p12)
}
  0x41   :  { %s2219_s5 = scalar_lea.vmem %s108_s27, 512  ;;  %p2224_p0 = scmp.lt.s32.totalorder %s108_s27, %s108_s27 }
  0x42   :  { %p2220_p13 = scmp.ne.s32.totalorder %s108_s27, %s2219_s5  ;;  %p2225_p1 = scmp.lt.s32.totalorder %s2219_s5, %s2219_s5 }
  0x44   :  { %p2226_p2 = por %p2225_p1, %p2224_p0 }
  0x46   :  { %p2227_p3 = pnand %p2226_p2, %p2220_p13 }
  0x48   :  { %2230 = shalt.err (!%p2227_p3)
}
  0x49   :  { %s2452_s20 = smov 128   ;;  %s2453_s21 = smov 8  }
  0x4a   :  { %113 = dma.hbm_to_vmem [thread:$0]  %s3573_s7, 512, %s108_s27, [#allocation17], %s2452_s20, %s2452_s20, %s2453_s21  }
  0x4b   :  { %s2231_s18 = scalar_lea.hbm %s3566_s0, 1024 }
  0x4c   :  { %p2232_p4 = scmp.ne.s32.totalorder %s3566_s0, %s2231_s18  ;;  %p2235_p5 = scmp.lt.u32.totalorder %s2231_s18, %s3566_s0 }
  0x4e   :  { %p2237_p6 = pnand %p2235_p5, %p2232_p4 }
  0x50   :  { %2240 = shalt.err (!%p2237_p6)
}
  0x51   :  { %s2241_s30 = scalar_lea.vmem %s32_s1, 1024  ;;  %p2246_p8 = scmp.lt.s32.totalorder %s32_s1, %s32_s1 }
  0x52   :  { %p2242_p7 = scmp.ne.s32.totalorder %s32_s1, %s2241_s30  ;;  %p2247_p9 = scmp.lt.s32.totalorder %s2241_s30, %s2241_s30 }
  0x54   :  { %p2248_p10 = por %p2247_p9, %p2246_p8 }
  0x56   :  { %p2249_p11 = pnand %p2248_p10, %p2242_p7 }
  0x58   :  { %2252 = shalt.err (!%p2249_p11)
}
  0x59   :  { %37 = dma.hbm_to_vmem [thread:$0]  %s3566_s0, 1024, %s32_s1, [#allocation5], %s2452_s20, %s2452_s20, %s2453_s21  }
  0x5a   :  { %s2454_s15 = smov [#allocation9]   ;;  %s2455_s17 = smov [#allocation12]  }
  0x5b   :  { %s56_s16 = sshll.u32 %s2454_s15, 4  ;;  %s76_s19 = sshll.u32 %s2455_s17, 4  ;;  %s57_s16 = int_to_ptr.vmem [resolvable:$true] %s56_s16  ;;  %s77_s19 = int_to_ptr.vmem [resolvable:$true] %s76_s19 }
  0x5c   :  { %s2253_s24 = scalar_lea.hbm %s3568_s2, 16 }
  0x5d   :  { %p2254_p12 = scmp.ne.s32.totalorder %s3568_s2, %s2253_s24  ;;  %p2257_p13 = scmp.lt.u32.totalorder %s2253_s24, %s3568_s2 }
  0x5f   :  { %p2259_p0 = pnand %p2257_p13, %p2254_p12 }
  0x61   :  { %2262 = shalt.err (!%p2259_p0)
}
  0x62   :  { %s2263_s0 = scalar_lea.vmem %s57_s16, 16  ;;  %s2267_s1 = scalar_lea.vmem %s57_s16, 32 }
  0x63   :  { %p2264_p1 = scmp.ne.s32.totalorder %s57_s16, %s2263_s0  ;;  %p2268_p2 = scmp.lt.s32.totalorder %s57_s16, %s57_s16 }
  0x64   :  { %p2269_p3 = scmp.lt.s32.totalorder %s2267_s1, %s2263_s0 }
  0x66   :  { %p2270_p4 = por %p2269_p3, %p2268_p2 }
  0x68   :  { %p2271_p5 = pnand %p2270_p4, %p2264_p1 }
  0x6a   :  { %2274 = shalt.err (!%p2271_p5)
}
  0x6b   :  { %59 = dma.hbm_to_vmem [thread:$0]  %s3568_s2, 16, %s57_s16, [#allocation8]  }
  0x6c   :  { %s2275_s7 = scalar_lea.hbm %s3570_s4, 16 }
  0x6d   :  { %p2276_p6 = scmp.ne.s32.totalorder %s3570_s4, %s2275_s7  ;;  %p2279_p7 = scmp.lt.u32.totalorder %s2275_s7, %s3570_s4 }
  0x6f   :  { %p2281_p8 = pnand %p2279_p7, %p2276_p6 }
  0x71   :  { %2284 = shalt.err (!%p2281_p8)
}
  0x72   :  { %s2285_s23 = scalar_lea.vmem %s77_s19, 16  ;;  %s2289_s24 = scalar_lea.vmem %s77_s19, 32 }
  0x73   :  { %p2286_p9 = scmp.ne.s32.totalorder %s77_s19, %s2285_s23  ;;  %p2290_p10 = scmp.lt.s32.totalorder %s77_s19, %s77_s19 }
  0x74   :  { %p2291_p11 = scmp.lt.s32.totalorder %s2289_s24, %s2285_s23 }
  0x76   :  { %p2292_p12 = por %p2291_p11, %p2290_p10 }
  0x78   :  { %p2293_p13 = pnand %p2292_p12, %p2286_p9 }
  0x7a   :  { %2296 = shalt.err (!%p2293_p13)
}
  0x7b   :  { %79 = dma.hbm_to_vmem [thread:$0]  %s3570_s4, 16, %s77_s19, [#allocation11]  }
  0x7c   :  { %s2456_s25 = smov [#allocation15]   ;;  %s2457_s18 = smov [#allocation18]  }
  0x7d   :  { %s95_s3 = sshll.u32 %s2456_s25, 4  ;;  %s119_s26 = sshll.u32 %s2457_s18, 4  ;;  %s96_s3 = int_to_ptr.vmem [resolvable:$true] %s95_s3  ;;  %s120_s26 = int_to_ptr.vmem [resolvable:$true] %s119_s26 }
  0x7e   :  { %s2297_s28 = scalar_lea.hbm %s3572_s6, 512 }
  0x7f   :  { %p2298_p0 = scmp.ne.s32.totalorder %s3572_s6, %s2297_s28  ;;  %p2301_p1 = scmp.lt.u32.totalorder %s2297_s28, %s3572_s6 }
  0x81   :  { %p2303_p2 = pnand %p2301_p1, %p2298_p0 }
  0x83   :  { %2306 = shalt.err (!%p2303_p2)
}
  0x84   :  { %s2307_s4 = scalar_lea.vmem %s96_s3, 512  ;;  %p2312_p4 = scmp.lt.s32.totalorder %s96_s3, %s96_s3 }
  0x85   :  { %p2308_p3 = scmp.ne.s32.totalorder %s96_s3, %s2307_s4  ;;  %p2313_p5 = scmp.lt.s32.totalorder %s2307_s4, %s2307_s4 }
  0x87   :  { %p2314_p6 = por %p2313_p5, %p2312_p4 }
  0x89   :  { %p2315_p7 = pnand %p2314_p6, %p2308_p3 }
  0x8b   :  { %2318 = shalt.err (!%p2315_p7)
}
  0x8c   :  { %101 = dma.hbm_to_vmem [thread:$0]  %s3572_s6, 512, %s96_s3, [#allocation14], %s2452_s20, %s2452_s20, %s2453_s21  }
  0x8d   :  { %s2319_s5 = scalar_lea.hbm %s3574_s8, 512 }
  0x8e   :  { %p2320_p8 = scmp.ne.s32.totalorder %s3574_s8, %s2319_s5  ;;  %p2323_p9 = scmp.lt.u32.totalorder %s2319_s5, %s3574_s8 }
  0x90   :  { %p2325_p10 = pnand %p2323_p9, %p2320_p8 }
  0x92   :  { %2328 = shalt.err (!%p2325_p10)
}
  0x93   :  { %s2329_s25 = scalar_lea.vmem %s120_s26, 512  ;;  %p2334_p12 = scmp.lt.s32.totalorder %s120_s26, %s120_s26 }
  0x94   :  { %p2330_p11 = scmp.ne.s32.totalorder %s120_s26, %s2329_s25  ;;  %p2335_p13 = scmp.lt.s32.totalorder %s2329_s25, %s2329_s25 }
  0x96   :  { %p2336_p0 = por %p2335_p13, %p2334_p12 }
  0x98   :  { %p2337_p1 = pnand %p2336_p0, %p2330_p11 }
  0x9a   :  { %2340 = shalt.err (!%p2337_p1)
}
  0x9b   :  { %125 = dma.hbm_to_vmem [thread:$0]  %s3574_s8, 512, %s120_s26, [#allocation17], %s2452_s20, %s2452_s20, %s2453_s21  }
  0x9c   :  { %s2458_s18 = smov [#allocation19]   ;;  %s2341_s22 = scalar_lea.hbm %s3575_s9, 512 }
  0x9d   :  { %s131_s0 = sshll.u32 %s2458_s18, 4  ;;  %p2342_p2 = scmp.ne.s32.totalorder %s3575_s9, %s2341_s22  ;;  %s132_s0 = int_to_ptr.vmem [resolvable:$true] %s131_s0 }
  0x9e   :  { %p2345_p3 = scmp.lt.u32.totalorder %s2341_s22, %s3575_s9 }
  0xa0   :  { %p2347_p4 = pnand %p2345_p3, %p2342_p2 }
  0xa2   :  { %2350 = shalt.err (!%p2347_p4)
}
  0xa3   :  { %s2351_s19 = scalar_lea.vmem %s132_s0, 512  ;;  %p2356_p6 = scmp.lt.s32.totalorder %s132_s0, %s132_s0 }
  0xa4   :  { %p2352_p5 = scmp.ne.s32.totalorder %s132_s0, %s2351_s19  ;;  %p2357_p7 = scmp.lt.s32.totalorder %s2351_s19, %s2351_s19 }
  0xa6   :  { %p2358_p8 = por %p2357_p7, %p2356_p6 }
  0xa8   :  { %p2359_p9 = pnand %p2358_p8, %p2352_p5 }
  0xaa   :  { %2362 = shalt.err (!%p2359_p9)
}
  0xab   :  { %137 = dma.hbm_to_vmem [thread:$0]  %s3575_s9, 512, %s132_s0, [#allocation20], %s2452_s20, %s2452_s20, %s2453_s21  }
  0xac   :  { %2429 = dma.done.wait [#allocation5], 1024  }
  0xad   :  { %2430 = vsyncadd [#allocation5], 4294966272 }
  0xae   :  { %2431 = dma.done.wait [#allocation8], 1040  }
  0xaf   :  { %2432 = vsyncadd [#allocation8], 4294966256 }
  0xb0   :  { %2433 = dma.done.wait [#allocation11], 32  }
  0xb1   :  { %2434 = vsyncadd [#allocation11], 4294967264 }
  0xb2   :  { %2435 = dma.done.wait [#allocation14], 640  }
  0xb3   :  { %2436 = vsyncadd [#allocation14], 4294966656 }
  0xb4   :  { %2437 = dma.done.wait [#allocation17], 1024  }
  0xb5   :  { %2438 = vsyncadd [#allocation17], 4294966272 }
  0xb6   :  { %2439 = dma.done.wait [#allocation20], 512  }
  0xb7   :  { %2440 = vsyncadd [#allocation20], 4294966784  ;;  %v2127_v0 = vld [vmem:[#allocation7] sm:$0xff]   ;;  %v2128_v1 = vld [vmem:[#allocation7 + $0x8] sm:$0xff]   ;;  %s2459_s9 = smov 96   ;;  %s2460_s27 = smov 32  }
  0xb8   :  { %2043 = vmatprep.subr.bf16.mxu0 %v2127_v0  ;;  %2091 = vmatprep.subr.bf16.mxu1 %v2127_v0  ;;  %v2129_v2 = vld [vmem:[#allocation7 + $0x10] sm:$0xff]   ;;  %v2130_v3 = vld [vmem:[#allocation7 + $0x18] sm:$0xff]   ;;  %v197_v4 = vld [vmem:[#allocation4] sm:$0xff]  ;;  %s2462_s15 = smov [#allocation21]   ;;  %s2463_s5 = smov [#allocation22]  }
  0xb9   :  { %2044 = vmatpush3.bf16.msra.mxu0 %v2127_v0  ;;  %2099 = vmatpush3.bf16.msra.mxu1 %v2127_v0  ;;  %v205_v5 = vunpack.c.l.s8.bf16 %v197_v4  ;;  %v201_v6 = vld [vmem:[#allocation4 + $0x20] sm:$0xff]  ;;  %v2132_v9 = vld [vmem:[#allocation7 + $0x28] sm:$0xff]   ;;  %v2133_v10 = vld [vmem:[#allocation7 + $0x30] sm:$0xff]   ;;  %v206_v14 = vunpack.c.h.s8.bf16 %v197_v4  ;;  %s1617_s17 = sshll.u32 %s2462_s15, 4  ;;  %s1629_s23 = sshll.u32 %s2463_s5, 4  ;;  %s1618_s17 = int_to_ptr.vmem [resolvable:$true] %s1617_s17  ;;  %s1630_s23 = int_to_ptr.vmem [resolvable:$true] %s1629_s23 }
  0xba   :  { %2045 = vmatprep.subr.bf16.mxu0 %v2128_v1  ;;  %2092 = vmatprep.subr.bf16.mxu1 %v2128_v1  ;;  %v213_v7 = vunpack.c.l.s8.bf16 %v201_v6  ;;  %v2131_v8 = vld [vmem:[#allocation7 + $0x20] sm:$0xff]   ;;  %v2134_v11 = vld [vmem:[#allocation7 + $0x38] sm:$0xff]   ;;  %v198_v12 = vld [vmem:[#allocation4 + $0x8] sm:$0xff]  ;;  %v214_v15 = vunpack.c.h.s8.bf16 %v201_v6  ;;  %s2464_s24 = smov [#allocation24]   ;;  %s2363_s16 = scalar_lea.vmem %s1618_s17, 2048 }
  0xbb   :  { %2059 = vmatprep.mubr.bf16.mxu0 %v205_v5  ;;  %v202_v13 = vld [vmem:[#allocation4 + $0x28] sm:$0xff]  ;;  %v207_v16 = vunpack.c.l.s8.bf16 %v198_v12  ;;  %v199_v18 = vld [vmem:[#allocation4 + $0x10] sm:$0xff]  ;;  %v208_v20 = vunpack.c.h.s8.bf16 %v198_v12  ;;  %v200_v24 = vld [vmem:[#allocation4 + $0x18] sm:$0xff]  ;;  %s1641_s2 = sshll.u32 %s2464_s24, 4  ;;  %p2364_p10 = scmp.ne.s32.totalorder %s1618_s17, %s2363_s16  ;;  %s3529_s2 = int_to_ptr.vmem [resolvable:$true] %s1641_s2 }
  0xbc   :  { %2075 = vmatprep.mubr.bf16.mxu1 %v213_v7  ;;  %v215_v17 = vunpack.c.l.s8.bf16 %v202_v13  ;;  %v203_v19 = vld [vmem:[#allocation4 + $0x30] sm:$0xff]  ;;  %v216_v21 = vunpack.c.h.s8.bf16 %v202_v13  ;;  %v209_v22 = vunpack.c.l.s8.bf16 %v199_v18  ;;  %v204_v25 = vld [vmem:[#allocation4 + $0x38] sm:$0xff]  ;;  %v210_v26 = vunpack.c.h.s8.bf16 %v199_v18  ;;  %v2668_v33 = vld [vmem:[#allocation10] ss:$0 sm:$0xff]  ;;  %p2368_p11 = scmp.lt.s32.totalorder %s1618_s17, %s1618_s17  ;;  %p2369_p12 = scmp.lt.s32.totalorder %s2363_s16, %s2363_s16 }
  0xbd   :  { %2046 = vmatpush3.bf16.msra.mxu0 %v2128_v1  ;;  %2100 = vmatpush3.bf16.msra.mxu1 %v2128_v1  ;;  %v217_v23 = vunpack.c.l.s8.bf16 %v203_v19  ;;  %v218_v27 = vunpack.c.h.s8.bf16 %v203_v19  ;;  %v211_v28 = vunpack.c.l.s8.bf16 %v200_v24  ;;  %v219_v29 = vunpack.c.l.s8.bf16 %v204_v25  ;;  %v175_v32 = vld [vmem:[#allocation15 + $0x10] sm:$0xff]  ;;  %v176_v37 = vld [vmem:[#allocation15 + $0x18] sm:$0xff]  ;;  %v173_v45 = vld [vmem:[#allocation15] sm:$0xff] }
  0xbe   :  { %2047 = vmatprep.subr.bf16.mxu0 %v2129_v2  ;;  %2093 = vmatprep.subr.bf16.mxu1 %v2129_v2  ;;  %v212_v30 = vunpack.c.h.s8.bf16 %v200_v24  ;;  %v220_v31 = vunpack.c.h.s8.bf16 %v204_v25  ;;  %v2670_v34 = vld [vmem:[#allocation9] ss:$0 sm:$0xff]  ;;  %v480_v35 = vmul.f32 %v2668_v33, %v175_v32  ;;  %v481_v47 = vmul.f32 %v2668_v33, %v176_v37  ;;  %v174_v50 = vld [vmem:[#allocation15 + $0x8] sm:$0xff]  ;;  %p2370_p13 = por %p2369_p12, %p2368_p11 }
  0xbf   :  { %v478_v52 = vmul.f32 %v2668_v33, %v173_v45  ;;  %v479_v55 = vmul.f32 %v2668_v33, %v174_v50 }
  0xc0   :  { %p2371_p0 = pnand %p2370_p13, %p2364_p10 }
  0xc1   :  { %2048 = vmatpush3.bf16.msra.mxu0 %v2129_v2  ;;  %2101 = vmatpush3.bf16.msra.mxu1 %v2129_v2 }
  0xc2   :  { %2049 = vmatprep.subr.bf16.mxu0 %v2130_v3  ;;  %2094 = vmatprep.subr.bf16.mxu1 %v2130_v3 }
  0xc5   :  { %2050 = vmatpush3.bf16.msra.mxu0 %v2130_v3  ;;  %2102 = vmatpush3.bf16.msra.mxu1 %v2130_v3 }
  0xc6   :  { %2051 = vmatprep.subr.bf16.mxu0 %v2131_v8  ;;  %2095 = vmatprep.subr.bf16.mxu1 %v2131_v8 }
  0xc9   :  { %2052 = vmatpush3.bf16.msra.mxu0 %v2131_v8  ;;  %2103 = vmatpush3.bf16.msra.mxu1 %v2131_v8 }
  0xca   :  { %2053 = vmatprep.subr.bf16.mxu0 %v2132_v9  ;;  %2096 = vmatprep.subr.bf16.mxu1 %v2132_v9 }
  0xcd   :  { %2054 = vmatpush3.bf16.msra.mxu0 %v2132_v9  ;;  %2104 = vmatpush3.bf16.msra.mxu1 %v2132_v9 }
  0xce   :  { %2055 = vmatprep.subr.bf16.mxu0 %v2133_v10  ;;  %2097 = vmatprep.subr.bf16.mxu1 %v2133_v10 }
  0xd1   :  { %2056 = vmatpush3.bf16.msra.mxu0 %v2133_v10  ;;  %2105 = vmatpush3.bf16.msra.mxu1 %v2133_v10 }
  0xd2   :  { %2057 = vmatprep.subr.bf16.mxu0 %v2134_v11  ;;  %2098 = vmatprep.subr.bf16.mxu1 %v2134_v11 }
  0xd5   :  { %2058 = vmatpush3.bf16.msra.mxu0 %v2134_v11  ;;  %2106 = vmatpush3.bf16.msra.mxu1 %v2134_v11 }
  0xd8   :  { %2060 = vmatmul.mubr.bf16.vlgmr.msra.gmra.mrb[0].mxu0 %v206_v14  ;;  %2076 = vmatmul.mubr.bf16.vlgmr.msra.gmra.mrb[0].mxu1 %v214_v15 }
  0xd9   :  { %2063 = vmatprep.mubr.bf16.mxu0 %v207_v16  ;;  %2079 = vmatprep.mubr.bf16.mxu1 %v215_v17 }
  0xe0   :  { %2064 = vmatmul.mubr.bf16.gmra.mrb[4].mxu0 %v208_v20  ;;  %2080 = vmatmul.mubr.bf16.gmra.mrb[4].mxu1 %v216_v21 }
  0xe1   :  { %2067 = vmatprep.mubr.bf16.mxu0 %v209_v22  ;;  %2083 = vmatprep.mubr.bf16.mxu1 %v217_v23 }
  0xe8   :  { %2068 = vmatmul.mubr.bf16.gmra.mrb[8].mxu0 %v210_v26  ;;  %2084 = vmatmul.mubr.bf16.gmra.mrb[8].mxu1 %v218_v27 }
  0xe9   :  { %2071 = vmatprep.mubr.bf16.mxu0 %v211_v28  ;;  %2087 = vmatprep.mubr.bf16.mxu1 %v219_v29 }
  0xf0   :  { %2072 = vmatmul.mubr.bf16.gmra.mrb[12].mxu0 %v212_v30  ;;  %2088 = vmatmul.mubr.bf16.gmra.mrb[12].mxu1 %v220_v31 }
 0x1ab   :  { %v2061_v36 = vpop.f32.mrb[0].mxu0  ;;  %v2673_v38 = vpop.f32.mrb[0].mxu1 }
 0x1ac   :  { %v335_v39 = vadd.f32 %v2061_v36, %v2670_v34  ;;  %v326_v40 = vpop.f32.mrb[1].mxu0  ;;  %v2676_v41 = vpop.f32.mrb[1].mxu1 }
 0x1ad   :  { %v2062_v42 = vpop.f32.mrb[2].mxu0  ;;  %v2678_v43 = vpop.f32.mrb[2].mxu1  ;;  %v327_v51 = vadd.f32 %v2670_v34, %v326_v40 }
 0x1ae   :  { %v2680_v44 = vadd.f32 %v480_v35, %v335_v39  ;;  %v338_v46 = vadd.f32 %v2062_v42, %v2670_v34  ;;  %v329_v48 = vpop.f32.mrb[3].mxu0  ;;  %v2684_v49 = vpop.f32.mrb[3].mxu1 }
 0x1af   :  { %v330_v54 = vadd.f32 %v2670_v34, %v329_v48  ;;  %v2704_v60 = vadd.f32 %v478_v52, %v327_v51 }
 0x1b0   :  { %498 = vrot.lane.b32.xlu0 %v2680_v44, %s2446_s13  ;;  %490 = vrot.lane.b32.xlu1 %v2680_v44, %s2459_s9  ;;  %v2692_v53 = vadd.f32 %v481_v47, %v338_v46  ;;  %v629_v4 = vmul.f32 %v2668_v33, %v2680_v44 }
 0x1b1   :  { %v2711_v2 = vadd.f32 %v479_v55, %v330_v54  ;;  %v627_v6 = vmul.f32 %v2668_v33, %v2704_v60 }
 0x1b2   :  { %v630_v9 = vmul.f32 %v2668_v33, %v2692_v53 }
 0x1b3   :  { %v2065_v56 = vpop.f32.mrb[4].mxu0  ;;  %v2696_v57 = vpop.f32.mrb[4].mxu1  ;;  %v628_v11 = vmul.f32 %v2668_v33, %v2711_v2 }
 0x1b4   :  { %v342_v58 = vpop.f32.mrb[5].mxu0  ;;  %506 = vrot.lane.b32.xlu0 %v2680_v44, %s2460_s27  ;;  %492 = vrot.lane.b32.xlu1 %v2692_v53, %s2459_s9  ;;  %v2702_v59 = vpop.f32.mrb[5].mxu1  ;;  %v351_v63 = vadd.f32 %v2065_v56, %v2670_v34  ;;  %v399_v56 = vadd.f32 %v2673_v38, %v2670_v34  ;;  %v402_v38 = vadd.f32 %v2678_v43, %v2670_v34 }
 0x1b5   :  { %v2066_v61 = vpop.f32.mrb[6].mxu0  ;;  %v2706_v62 = vpop.f32.mrb[6].mxu1  ;;  %v343_v3 = vadd.f32 %v2670_v34, %v342_v58 }
 0x1b6   :  { %v345_v0 = vpop.f32.mrb[7].mxu0  ;;  %v2709_v1 = vpop.f32.mrb[7].mxu1  ;;  %v354_v5 = vadd.f32 %v2066_v61, %v2670_v34  ;;  %v2724_v8 = vadd.f32 %v629_v4, %v351_v63 }
 0x1b7   :  { %v346_v7 = vadd.f32 %v2670_v34, %v345_v0  ;;  %v2728_v10 = vadd.f32 %v627_v6, %v343_v3  ;;  %v391_v3 = vadd.f32 %v2670_v34, %v2676_v41  ;;  %v394_v41 = vadd.f32 %v2670_v34, %v2684_v49 }
 0x1b8   :  { %500 = vrot.lane.b32.xlu1 %v2692_v53, %s2446_s13  ;;  %486 = vrot.lane.b32.xlu0 %v2704_v60, %s2459_s9  ;;  %v2734_v14 = vadd.f32 %v630_v9, %v354_v5  ;;  %v768_v22 = vmul.f32 %v2668_v33, %v2724_v8 }
 0x1b9   :  { %v2743_v18 = vadd.f32 %v628_v11, %v346_v7  ;;  %v766_v26 = vmul.f32 %v2668_v33, %v2728_v10 }
 0x1ba   :  { %v769_v29 = vmul.f32 %v2668_v33, %v2734_v14 }
 0x1bb   :  { %v2069_v12 = vpop.f32.mrb[8].mxu0  ;;  %v2732_v13 = vpop.f32.mrb[8].mxu1  ;;  %v767_v31 = vmul.f32 %v2668_v33, %v2743_v18 }
 0x1bc   :  { %v367_v15 = vadd.f32 %v2069_v12, %v2670_v34  ;;  %v358_v16 = vpop.f32.mrb[9].mxu0  ;;  %508 = vrot.lane.b32.xlu1 %v2692_v53, %s2460_s27  ;;  %494 = vrot.lane.b32.xlu0 %v2704_v60, %s2446_s13  ;;  %v2741_v17 = vpop.f32.mrb[9].mxu1  ;;  %v415_v12 = vadd.f32 %v2696_v57, %v2670_v34  ;;  %v418_v57 = vadd.f32 %v2706_v62, %v2670_v34 }
 0x1bd   :  { %v359_v19 = vadd.f32 %v2670_v34, %v358_v16  ;;  %v2070_v20 = vpop.f32.mrb[10].mxu0  ;;  %v2746_v21 = vpop.f32.mrb[10].mxu1  ;;  %v407_v16 = vadd.f32 %v2670_v34, %v2702_v59  ;;  %v410_v59 = vadd.f32 %v2670_v34, %v2709_v1 }
 0x1be   :  { %v370_v23 = vadd.f32 %v2070_v20, %v2670_v34  ;;  %v361_v24 = vpop.f32.mrb[11].mxu0  ;;  %v2751_v25 = vpop.f32.mrb[11].mxu1  ;;  %v2756_v28 = vadd.f32 %v768_v22, %v367_v15 }
 0x1bf   :  { %v362_v27 = vadd.f32 %v2670_v34, %v361_v24  ;;  %v2764_v30 = vadd.f32 %v766_v26, %v359_v19  ;;  %v431_v26 = vadd.f32 %v2732_v13, %v2670_v34  ;;  %v434_v13 = vadd.f32 %v2746_v21, %v2670_v34 }
 0x1c0   :  { %496 = vrot.lane.b32.xlu1 %v2711_v2, %s2446_s13  ;;  %502 = vrot.lane.b32.xlu0 %v2704_v60, %s2460_s27  ;;  %v2768_v32 = vadd.f32 %v769_v29, %v370_v23  ;;  %v907_v40 = vmul.f32 %v2668_v33, %v2756_v28  ;;  %v423_v29 = vadd.f32 %v2670_v34, %v2741_v17 }
 0x1c1   :  { %v2770_v35 = vadd.f32 %v767_v31, %v362_v27  ;;  %v905_v47 = vmul.f32 %v2668_v33, %v2764_v30  ;;  %v426_v17 = vadd.f32 %v2670_v34, %v2751_v25 }
 0x1c2   :  { %v908_v54 = vmul.f32 %v2668_v33, %v2768_v32 }
 0x1c3   :  { %v2073_v36 = vpop.f32.mrb[12].mxu0  ;;  %v2089_v37 = vpop.f32.mrb[12].mxu1  ;;  %v906_v0 = vmul.f32 %v2668_v33, %v2770_v35 }
 0x1c4   :  { %v383_v39 = vadd.f32 %v2073_v36, %v2670_v34  ;;  %v374_v42 = vpop.f32.mrb[13].mxu0  ;;  %504 = vrot.lane.b32.xlu1 %v2711_v2, %s2460_s27  ;;  %488 = vrot.lane.b32.xlu0 %v2711_v2, %s2459_s9  ;;  %v438_v45 = vpop.f32.mrb[13].mxu1 }
 0x1c5   :  { %v375_v46 = vadd.f32 %v2670_v34, %v374_v42  ;;  %v2074_v48 = vpop.f32.mrb[14].mxu0  ;;  %v2090_v50 = vpop.f32.mrb[14].mxu1 }
 0x1c6   :  { %v2782_v51 = vadd.f32 %v907_v40, %v383_v39  ;;  %v386_v52 = vadd.f32 %v2074_v48, %v2670_v34  ;;  %v377_v55 = vpop.f32.mrb[15].mxu0  ;;  %v441_v58 = vpop.f32.mrb[15].mxu1  ;;  %v439_v48 = vadd.f32 %v2670_v34, %v438_v45  ;;  %v450_v25 = vadd.f32 %v2090_v50, %v2670_v34 }
 0x1c7   :  { %v2789_v61 = vadd.f32 %v905_v47, %v375_v46  ;;  %v378_v63 = vadd.f32 %v2670_v34, %v377_v55  ;;  %v447_v46 = vadd.f32 %v2089_v37, %v2670_v34  ;;  %v442_v45 = vadd.f32 %v2670_v34, %v441_v58 }
 0x1c8   :  { %v2796_v4 = vadd.f32 %v908_v54, %v386_v52  ;;  %v1046_v5 = vmul.f32 %v2668_v33, %v2782_v51  ;;  %641 = vrot.lane.b32.xlu1 %v2734_v14, %s2459_s9  ;;  %639 = vrot.lane.b32.xlu0 %v2724_v8, %s2459_s9 }
 0x1c9   :  { %v2806_v6 = vadd.f32 %v906_v0, %v378_v63  ;;  %v1044_v7 = vmul.f32 %v2668_v33, %v2789_v61 }
 0x1ca   :  { %v2812_v9 = vadd.f32 %v1046_v5, %v399_v56  ;;  %v1047_v11 = vmul.f32 %v2668_v33, %v2796_v4  ;;  %v454_v5 = vld [vmem:[#allocation12] sm:$0x1] }
 0x1cb   :  { %v2818_v15 = vadd.f32 %v1044_v7, %v391_v3  ;;  %v1045_v43 = vmul.f32 %v2668_v33, %v2806_v6 }
 0x1cc   :  { %v2824_v19 = vadd.f32 %v1047_v11, %v402_v38  ;;  %v1185_v49 = vmul.f32 %v2668_v33, %v2812_v9  ;;  %649 = vrot.lane.b32.xlu1 %v2734_v14, %s2446_s13  ;;  %647 = vrot.lane.b32.xlu0 %v2724_v8, %s2446_s13  ;;  %v455_v11 = vsub.f32 1.0, %v454_v5 }
 0x1cd   :  { %v2834_v20 = vadd.f32 %v1045_v43, %v394_v41  ;;  %v1183_v22 = vmul.f32 %v2668_v33, %v2818_v15  ;;  %v183_v43 = vld [vmem:[#allocation16 + $0x10] sm:$0xff] }
 0x1ce   :  { %v2840_v23 = vadd.f32 %v1185_v49, %v415_v12  ;;  %v1186_v24 = vmul.f32 %v2668_v33, %v2824_v19 }
 0x1cf   :  { %v2846_v27 = vadd.f32 %v1183_v22, %v407_v16  ;;  %v1184_v62 = vmul.f32 %v2668_v33, %v2834_v20 }
 0x1d0   :  { %v2852_v31 = vadd.f32 %v1186_v24, %v418_v57  ;;  %v1324_v1 = vmul.f32 %v2668_v33, %v2840_v23  ;;  %657 = vrot.lane.b32.xlu1 %v2734_v14, %s2460_s27  ;;  %655 = vrot.lane.b32.xlu0 %v2724_v8, %s2460_s27  ;;  %v191_v24 = vld [vmem:[#allocation18 + $0x10] sm:$0xff] }
 0x1d1   :  { %v2862_v36 = vadd.f32 %v1184_v62, %v410_v59  ;;  %v1322_v39 = vmul.f32 %v2668_v33, %v2846_v27 }
 0x1d2   :  { %v2868_v40 = vadd.f32 %v1324_v1, %v431_v26  ;;  %v1325_v42 = vmul.f32 %v2668_v33, %v2852_v31  ;;  %v2993_v26 = vld [vmem:[#allocation19 + $0x10] sm:$0xff] }
 0x1d3   :  { %v2873_v47 = vadd.f32 %v1322_v39, %v423_v29  ;;  %v1323_v21 = vmul.f32 %v2668_v33, %v2862_v36  ;;  %v549_v39 = vmul.f32 %v2993_v26, %v191_v24 }
 0x1d4   :  { %v2878_v52 = vadd.f32 %v1325_v42, %v434_v13  ;;  %v1463_v54 = vmul.f32 %v2668_v33, %v2868_v40  ;;  %637 = vrot.lane.b32.xlu1 %v2743_v18, %s2459_s9  ;;  %635 = vrot.lane.b32.xlu0 %v2728_v10, %s2459_s9  ;;  %v184_v42 = vld [vmem:[#allocation16 + $0x18] sm:$0xff] }
 0x1d5   :  { %v2887_v37 = vadd.f32 %v1323_v21, %v426_v17  ;;  %v1461_v55 = vmul.f32 %v2668_v33, %v2873_v47 }
 0x1d6   :  { %v2892_v56 = vadd.f32 %v1463_v54, %v447_v46  ;;  %v1464_v63 = vmul.f32 %v2668_v33, %v2878_v52 }
 0x1d7   :  { %v2896_v0 = vadd.f32 %v1461_v55, %v439_v48  ;;  %v1462_v3 = vmul.f32 %v2668_v33, %v2887_v37  ;;  %v524_v33 = vlaneseq  ;;  %v3007_v55 = vld [vmem:[#allocation19 + $0x18] sm:$0xff] }
 0x1d8   :  { %1602 = vst [vmem:[#allocation24 + $0x10] sm:$0xff] %v2892_v56  ;;  %v2901_v50 = vadd.f32 %v1464_v63, %v450_v25  ;;  %645 = vrot.lane.b32.xlu1 %v2743_v18, %s2446_s13  ;;  %643 = vrot.lane.b32.xlu0 %v2728_v10, %s2446_s13  ;;  %v192_v25 = vld [vmem:[#allocation18 + $0x18] sm:$0xff] }
 0x1d9   :  { %1600 = vst [vmem:[#allocation24] sm:$0xff] %v2896_v0  ;;  %v2908_v34 = vadd.f32 %v1462_v3, %v442_v45  ;;  %v525_v58 = vshrl.u32 %v524_v33, 7  ;;  %v3009_v63 = vld [vmem:[#allocation13] ss:$0 sm:$0xff] }
 0x1da   :  { %1603 = vst [vmem:[#allocation24 + $0x18] sm:$0xff] %v2901_v50 }
 0x1db   :  { %1601 = vst [vmem:[#allocation24 + $0x8] sm:$0xff] %v2908_v34  ;;  %v526_v38 = vsub.s32 0, %v525_v58 }
 0x1dc   :  { %653 = vrot.lane.b32.xlu1 %v2743_v18, %s2460_s27  ;;  %651 = vrot.lane.b32.xlu0 %v2728_v10, %s2460_s27 }
 0x1dd   :  { %v2988_v12 = vrot.slane %v454_v5, %v526_v38  ;;  %v2991_v22 = vrot.slane %v455_v11, %v526_v38  ;;  %v550_v5 = vmul.f32 %v3007_v55, %v192_v25 }
 0x1df   :  { %v531_v62 = vmul.f32 %v2988_v12, %v183_v43  ;;  %v532_v33 = vmul.f32 %v2988_v12, %v184_v42 }
 0x1e0   :  { %780 = vrot.lane.b32.xlu1 %v2768_v32, %s2459_s9  ;;  %778 = vrot.lane.b32.xlu0 %v2756_v28, %s2459_s9 }
 0x1e4   :  { %788 = vrot.lane.b32.xlu1 %v2768_v32, %s2446_s13  ;;  %786 = vrot.lane.b32.xlu0 %v2756_v28, %s2446_s13 }
 0x1e8   :  { %796 = vrot.lane.b32.xlu1 %v2768_v32, %s2460_s27  ;;  %794 = vrot.lane.b32.xlu0 %v2756_v28, %s2460_s27 }
 0x1ec   :  { %776 = vrot.lane.b32.xlu1 %v2770_v35, %s2459_s9  ;;  %774 = vrot.lane.b32.xlu0 %v2764_v30, %s2459_s9 }
 0x1f0   :  { %784 = vrot.lane.b32.xlu1 %v2770_v35, %s2446_s13  ;;  %782 = vrot.lane.b32.xlu0 %v2764_v30, %s2446_s13 }
 0x1f4   :  { %792 = vrot.lane.b32.xlu1 %v2770_v35, %s2460_s27  ;;  %790 = vrot.lane.b32.xlu0 %v2764_v30, %s2460_s27 }
 0x1f8   :  { %919 = vrot.lane.b32.xlu1 %v2796_v4, %s2459_s9  ;;  %917 = vrot.lane.b32.xlu0 %v2782_v51, %s2459_s9 }
 0x1fc   :  { %927 = vrot.lane.b32.xlu1 %v2796_v4, %s2446_s13  ;;  %925 = vrot.lane.b32.xlu0 %v2782_v51, %s2446_s13 }
 0x200   :  { %935 = vrot.lane.b32.xlu1 %v2796_v4, %s2460_s27  ;;  %933 = vrot.lane.b32.xlu0 %v2782_v51, %s2460_s27 }
 0x204   :  { %915 = vrot.lane.b32.xlu1 %v2806_v6, %s2459_s9  ;;  %913 = vrot.lane.b32.xlu0 %v2789_v61, %s2459_s9 }
 0x208   :  { %923 = vrot.lane.b32.xlu1 %v2806_v6, %s2446_s13  ;;  %921 = vrot.lane.b32.xlu0 %v2789_v61, %s2446_s13 }
 0x20c   :  { %931 = vrot.lane.b32.xlu1 %v2806_v6, %s2460_s27  ;;  %929 = vrot.lane.b32.xlu0 %v2789_v61, %s2460_s27 }
 0x210   :  { %1058 = vrot.lane.b32.xlu1 %v2824_v19, %s2459_s9  ;;  %1056 = vrot.lane.b32.xlu0 %v2812_v9, %s2459_s9 }
 0x214   :  { %1066 = vrot.lane.b32.xlu1 %v2824_v19, %s2446_s13  ;;  %1064 = vrot.lane.b32.xlu0 %v2812_v9, %s2446_s13 }
 0x218   :  { %1074 = vrot.lane.b32.xlu1 %v2824_v19, %s2460_s27  ;;  %1072 = vrot.lane.b32.xlu0 %v2812_v9, %s2460_s27 }
 0x21c   :  { %1054 = vrot.lane.b32.xlu1 %v2834_v20, %s2459_s9  ;;  %1052 = vrot.lane.b32.xlu0 %v2818_v15, %s2459_s9 }
 0x220   :  { %1062 = vrot.lane.b32.xlu1 %v2834_v20, %s2446_s13  ;;  %1060 = vrot.lane.b32.xlu0 %v2818_v15, %s2446_s13 }
 0x222   :  { %v499_v7 = vpop.permute.xlu0 %498  ;;  %v491_v41 = vpop.permute.xlu1 %490 }
 0x223   :  { %v512_v57 = vadd.f32 %v491_v41, %v2680_v44 }
 0x224   :  { %1070 = vrot.lane.b32.xlu1 %v2834_v20, %s2460_s27  ;;  %1068 = vrot.lane.b32.xlu0 %v2818_v15, %s2460_s27 }
 0x226   :  { %v507_v16 = vpop.permute.xlu0 %506  ;;  %v493_v49 = vpop.permute.xlu1 %492 }
 0x227   :  { %v516_v59 = vadd.f32 %v507_v16, %v499_v7  ;;  %v513_v54 = vadd.f32 %v493_v49, %v2692_v53  ;;  %v181_v53 = vld [vmem:[#allocation16] sm:$0xff] }
 0x228   :  { %1197 = vrot.lane.b32.xlu1 %v2852_v31, %s2459_s9  ;;  %1195 = vrot.lane.b32.xlu0 %v2840_v23, %s2459_s9  ;;  %v189_v49 = vld [vmem:[#allocation18] sm:$0xff] }
 0x229   :  { %v520_v29 = vadd.f32 %v516_v59, %v512_v57  ;;  %v3020_v57 = vld [vmem:[#allocation19] sm:$0xff] }
 0x22a   :  { %v501_v1 = vpop.permute.xlu1 %500  ;;  %v487_v13 = vpop.permute.xlu0 %486 }
 0x22b   :  { %v541_v44 = vmul.f32 %v2991_v22, %v520_v29  ;;  %v510_v11 = vadd.f32 %v487_v13, %v2704_v60  ;;  %v547_v60 = vmul.f32 %v3020_v57, %v189_v49 }
 0x22c   :  { %1205 = vrot.lane.b32.xlu1 %v2852_v31, %s2446_s13  ;;  %1203 = vrot.lane.b32.xlu0 %v2840_v23, %s2446_s13 }
 0x22d   :  { %v545_v17 = vadd.f32 %v541_v44, %v531_v62  ;;  %v529_v62 = vmul.f32 %v2988_v12, %v181_v53 }
 0x22e   :  { %v509_v46 = vpop.permute.xlu1 %508  ;;  %v495_v21 = vpop.permute.xlu0 %494 }
 0x22f   :  { %v553_v48 = vsub.f32 %v545_v17, %v549_v39  ;;  %v517_v45 = vadd.f32 %v509_v46, %v501_v1  ;;  %v182_v39 = vld [vmem:[#allocation16 + $0x8] sm:$0xff] }
 0x230   :  { %1213 = vrot.lane.b32.xlu1 %v2852_v31, %s2460_s27  ;;  %1211 = vrot.lane.b32.xlu0 %v2840_v23, %s2460_s27 }
 0x231   :  { %v557_v3 = vsub.f32 %v553_v48, %v183_v43  ;;  %v521_v58 = vadd.f32 %v517_v45, %v513_v54  ;;  %v190_v48 = vld [vmem:[#allocation18 + $0x8] sm:$0xff] }
 0x232   :  { %v497_v38 = vpop.permute.xlu1 %496  ;;  %v503_v7 = vpop.permute.xlu0 %502  ;;  %v3031_v54 = vld [vmem:[#allocation19 + $0x8] sm:$0xff] }
 0x233   :  { %v565_v41 = vmul.f32 %v3009_v63, %v557_v3  ;;  %v542_v16 = vmul.f32 %v2991_v22, %v521_v58  ;;  %v514_v59 = vadd.f32 %v503_v7, %v495_v21  ;;  %v530_v3 = vmul.f32 %v2988_v12, %v182_v39 }
 0x234   :  { %1193 = vrot.lane.b32.xlu1 %v2862_v36, %s2459_s9  ;;  %1191 = vrot.lane.b32.xlu0 %v2846_v27, %s2459_s9  ;;  %v548_v58 = vmul.f32 %v3031_v54, %v190_v48 }
 0x235   :  { %v546_v24 = vadd.f32 %v542_v16, %v532_v33  ;;  %v518_v29 = vadd.f32 %v514_v59, %v510_v11  ;;  %v3027_v1 = vadd.f32 %v565_v41, %v183_v43 }
 0x236   :  { %v505_v13 = vpop.permute.xlu1 %504  ;;  %v489_v44 = vpop.permute.xlu0 %488 }
 0x237   :  { %v554_v17 = vsub.f32 %v546_v24, %v550_v5  ;;  %v539_v46 = vmul.f32 %v2991_v22, %v518_v29  ;;  %v515_v21 = vadd.f32 %v505_v13, %v497_v38  ;;  %v511_v25 = vadd.f32 %v489_v44, %v2711_v2 }
 0x238   :  { %1201 = vrot.lane.b32.xlu1 %v2862_v36, %s2446_s13  ;;  %1199 = vrot.lane.b32.xlu0 %v2846_v27, %s2446_s13  ;;  %vm573_vm0 = vcmp.gt.f32.partialorder %v3027_v1, %v2993_v26 }
 0x239   :  { %v558_v43 = vsub.f32 %v554_v17, %v184_v42  ;;  %v543_v45 = vadd.f32 %v539_v46, %v529_v62  ;;  %v519_v33 = vadd.f32 %v515_v21, %v511_v25  ;;  %v2461_v62 = vmov 0.0  }
 0x23a   :  { %v642_v5 = vpop.permute.xlu1 %641  ;;  %v640_v38 = vpop.permute.xlu0 %639  ;;  %v1678_v29 = vsel %vm573_vm0, 1.0, %v2461_v62 }
 0x23b   :  { %v566_v7 = vmul.f32 %v3009_v63, %v558_v43  ;;  %v551_v41 = vsub.f32 %v543_v45, %v547_v60  ;;  %v540_v2 = vmul.f32 %v2991_v22, %v519_v33  ;;  %v585_v48 = vmul.f32 %v1678_v29, %v3009_v63 }
 0x23c   :  { %1209 = vrot.lane.b32.xlu1 %v2862_v36, %s2460_s27  ;;  %1207 = vrot.lane.b32.xlu0 %v2846_v27, %s2460_s27 }
 0x23d   :  { %v3048_v11 = vadd.f32 %v566_v7, %v184_v42  ;;  %v555_v16 = vsub.f32 %v551_v41, %v181_v53  ;;  %v544_v49 = vadd.f32 %v540_v2, %v530_v3  ;;  %v662_v3 = vadd.f32 %v642_v5, %v2734_v14 }
 0x23e   :  { %v650_v59 = vpop.permute.xlu1 %649  ;;  %v648_v24 = vpop.permute.xlu0 %647  ;;  %v661_v7 = vadd.f32 %v640_v38, %v2724_v8 }
 0x23f   :  { %v1851_v60 = vpack.c.bf16 %v3048_v11, %v3027_v1  ;;  %v563_v13 = vmul.f32 %v3009_v63, %v555_v16  ;;  %v552_v44 = vsub.f32 %v544_v49, %v548_v58  ;;  %vm574_vm1 = vcmp.gt.f32.partialorder %v3048_v11, %v3007_v55 }
 0x240   :  { %1336 = vrot.lane.b32.xlu1 %v2878_v52, %s2459_s9  ;;  %1334 = vrot.lane.b32.xlu0 %v2868_v40, %s2459_s9  ;;  %v1679_v42 = vsel %vm574_vm1, 1.0, %v2461_v62  ;;  %v675_v38 = vmul.f32 %v3048_v11, %v2988_v12 }
 0x241   :  { %2003 = vst [vmem:[#allocation21 + $0x8] sm:$0xff] %v1851_v60   ;;  %v3061_v17 = vadd.f32 %v563_v13, %v181_v53  ;;  %v556_v46 = vsub.f32 %v552_v44, %v182_v39  ;;  %v586_v21 = vmul.f32 %v1679_v42, %v3009_v63  ;;  %v686_v44 = vmul.f32 %v585_v48, %v2993_v26 }
 0x242   :  { %v658_v25 = vpop.permute.xlu1 %657  ;;  %v656_v43 = vpop.permute.xlu0 %655 }
 0x243   :  { %v564_v45 = vmul.f32 %v3009_v63, %v556_v46  ;;  %v666_v33 = vadd.f32 %v658_v25, %v650_v59  ;;  %v1861_v58 = vpack.c.bf16 %v586_v21, %v585_v48  ;;  %v665_v41 = vadd.f32 %v656_v43, %v648_v24 }
 0x244   :  { %1344 = vrot.lane.b32.xlu1 %v2878_v52, %s2446_s13  ;;  %1342 = vrot.lane.b32.xlu0 %v2868_v40, %s2446_s13  ;;  %vm571_vm2 = vcmp.gt.f32.partialorder %v3061_v17, %v3020_v57  ;;  %v674_v24 = vmul.f32 %v3027_v1, %v2988_v12  ;;  %v687_v29 = vmul.f32 %v586_v21, %v3007_v55 }
 0x245   :  { %v3074_v53 = vadd.f32 %v564_v45, %v182_v39  ;;  %v670_v2 = vadd.f32 %v666_v33, %v662_v3  ;;  %2004 = vst [vmem:[#allocation22 + $0x8] sm:$0xff] %v1861_v58   ;;  %v669_v16 = vadd.f32 %v665_v41, %v661_v7  ;;  %v1676_v59 = vsel %vm571_vm2, 1.0, %v2461_v62  ;;  %v3096_v33 = vld [vmem:[#allocation13 + $0x1] ss:$0 sm:$0xff] }
 0x246   :  { %v638_v14 = vpop.permute.xlu1 %637  ;;  %v636_v5 = vpop.permute.xlu0 %635  ;;  %v583_v45 = vmul.f32 %v1676_v59, %v3009_v63 }
 0x247   :  { %v1846_v8 = vpack.c.bf16 %v3074_v53, %v3061_v17  ;;  %v679_v49 = vmul.f32 %v670_v2, %v2991_v22  ;;  %v678_v39 = vmul.f32 %v669_v16, %v2991_v22  ;;  %vm572_vm3 = vcmp.gt.f32.partialorder %v3074_v53, %v3031_v54 }
 0x248   :  { %1352 = vrot.lane.b32.xlu1 %v2878_v52, %s2460_s27  ;;  %1350 = vrot.lane.b32.xlu0 %v2868_v40, %s2460_s27  ;;  %v1677_v13 = vsel %vm572_vm3, 1.0, %v2461_v62  ;;  %v660_v41 = vadd.f32 %v638_v14, %v2743_v18 }
 0x249   :  { %1847 = vst [vmem:[#allocation21] sm:$0xff] %v1846_v8   ;;  %v683_v60 = vadd.f32 %v679_v49, %v675_v38  ;;  %v682_v42 = vadd.f32 %v678_v39, %v674_v24  ;;  %v584_v43 = vmul.f32 %v1677_v13, %v3009_v63  ;;  %v659_v8 = vadd.f32 %v636_v5, %v2728_v10 }
 0x24a   :  { %v646_v46 = vpop.permute.xlu1 %645  ;;  %v644_v25 = vpop.permute.xlu0 %643  ;;  %v672_v10 = vmul.f32 %v3061_v17, %v2988_v12 }
 0x24b   :  { %v691_v3 = vsub.f32 %v683_v60, %v687_v29  ;;  %v690_v58 = vsub.f32 %v682_v42, %v686_v44  ;;  %v1856_v21 = vpack.c.bf16 %v584_v43, %v583_v45  ;;  %v673_v60 = vmul.f32 %v3074_v53, %v2988_v12 }
 0x24c   :  { %1332 = vrot.lane.b32.xlu1 %v2887_v37, %s2459_s9  ;;  %1330 = vrot.lane.b32.xlu0 %v2873_v47, %s2459_s9  ;;  %v684_v44 = vmul.f32 %v583_v45, %v3020_v57 }
 0x24d   :  { %v695_v48 = vsub.f32 %v691_v3, %v3048_v11  ;;  %v694_v7 = vsub.f32 %v690_v58, %v3027_v1  ;;  %1857 = vst [vmem:[#allocation22] sm:$0xff] %v1856_v21  }
 0x24e   :  { %v654_v2 = vpop.permute.xlu1 %653  ;;  %v652_v63 = vpop.permute.xlu0 %651 }
 0x24f   :  { %v703_v16 = vmul.f32 %v3096_v33, %v695_v48  ;;  %v664_v38 = vadd.f32 %v654_v2, %v646_v46  ;;  %v663_v49 = vadd.f32 %v652_v63, %v644_v25  ;;  %v702_v59 = vmul.f32 %v3096_v33, %v694_v7 }
 0x250   :  { %1340 = vrot.lane.b32.xlu1 %v2887_v37, %s2446_s13  ;;  %1338 = vrot.lane.b32.xlu0 %v2873_v47, %s2446_s13 }
 0x251   :  { %v3113_v24 = vadd.f32 %v703_v16, %v3048_v11  ;;  %v668_v18 = vadd.f32 %v664_v38, %v660_v41  ;;  %v667_v14 = vadd.f32 %v663_v49, %v659_v8  ;;  %v3116_v39 = vadd.f32 %v702_v59, %v3027_v1 }
 0x252   :  { %v781_v5 = vpop.permute.xlu1 %780  ;;  %v779_v29 = vpop.permute.xlu0 %778  ;;  %v685_v1 = vmul.f32 %v584_v43, %v3031_v54 }
 0x253   :  { %v677_v13 = vmul.f32 %v668_v18, %v2991_v22  ;;  %v676_v11 = vmul.f32 %v667_v14, %v2991_v22  ;;  %v1871_v42 = vpack.c.bf16 %v3113_v24, %v3116_v39  ;;  %vm711_vm4 = vcmp.gt.f32.partialorder %v3113_v24, %v3007_v55 }
 0x254   :  { %1348 = vrot.lane.b32.xlu1 %v2887_v37, %s2460_s27  ;;  %1346 = vrot.lane.b32.xlu0 %v2873_v47, %s2460_s27  ;;  %v1692_v45 = vsel %vm711_vm4, 1.0, %v2461_v62  ;;  %vm710_vm5 = vcmp.gt.f32.partialorder %v3116_v39, %v2993_v26  ;;  %v801_v8 = vadd.f32 %v781_v5, %v2768_v32  ;;  %v800_v38 = vadd.f32 %v779_v29, %v2756_v28 }
 0x255   :  { %v681_v46 = vadd.f32 %v677_v13, %v673_v60  ;;  %v680_v25 = vadd.f32 %v676_v11, %v672_v10  ;;  %2005 = vst [vmem:[#allocation21 + $0x18] sm:$0xff] %v1871_v42   ;;  %v723_v43 = vmul.f32 %v1692_v45, %v3096_v33  ;;  %v1691_v21 = vsel %vm710_vm5, 1.0, %v2461_v62 }
 0x256   :  { %v789_v3 = vpop.permute.xlu1 %788  ;;  %v787_v58 = vpop.permute.xlu0 %786  ;;  %v722_v41 = vmul.f32 %v1691_v21, %v3096_v33  ;;  %v814_v29 = vmul.f32 %v3113_v24, %v2988_v12 }
 0x257   :  { %v689_v48 = vsub.f32 %v681_v46, %v685_v1  ;;  %v688_v7 = vsub.f32 %v680_v25, %v684_v44  ;;  %v813_v46 = vmul.f32 %v3116_v39, %v2988_v12 }
 0x258   :  { %1475 = vrot.lane.b32.xlu1 %v2901_v50, %s2459_s9  ;;  %1473 = vrot.lane.b32.xlu0 %v2892_v56, %s2459_s9  ;;  %v1881_v16 = vpack.c.bf16 %v723_v43, %v722_v41  ;;  %v825_v25 = vmul.f32 %v722_v41, %v2993_v26 }
 0x259   :  { %v693_v2 = vsub.f32 %v689_v48, %v3074_v53  ;;  %v692_v63 = vsub.f32 %v688_v7, %v3061_v17 }
 0x25a   :  { %v797_v49 = vpop.permute.xlu1 %796  ;;  %v795_v59 = vpop.permute.xlu0 %794  ;;  %2006 = vst [vmem:[#allocation22 + $0x18] sm:$0xff] %v1881_v16   ;;  %v3182_v16 = vld [vmem:[#allocation13 + $0x2] ss:$0 sm:$0xff] }
 0x25b   :  { %v701_v18 = vmul.f32 %v3096_v33, %v693_v2  ;;  %v700_v14 = vmul.f32 %v3096_v33, %v692_v63  ;;  %v805_v10 = vadd.f32 %v797_v49, %v789_v3  ;;  %v804_v60 = vadd.f32 %v795_v59, %v787_v58 }
 0x25c   :  { %1483 = vrot.lane.b32.xlu1 %v2901_v50, %s2446_s13  ;;  %1481 = vrot.lane.b32.xlu0 %v2892_v56, %s2446_s13 }
 0x25d   :  { %v3155_v13 = vadd.f32 %v701_v18, %v3074_v53  ;;  %v3158_v28 = vadd.f32 %v700_v14, %v3061_v17  ;;  %v809_v32 = vadd.f32 %v805_v10, %v801_v8  ;;  %v808_v5 = vadd.f32 %v804_v60, %v800_v38 }
 0x25e   :  { %v777_v44 = vpop.permute.xlu1 %776  ;;  %v775_v11 = vpop.permute.xlu0 %774  ;;  %v826_v17 = vmul.f32 %v723_v43, %v3007_v55 }
 0x25f   :  { %v1866_v42 = vpack.c.bf16 %v3155_v13, %v3158_v28  ;;  %v818_v1 = vmul.f32 %v809_v32, %v2991_v22  ;;  %v817_v53 = vmul.f32 %v808_v5, %v2991_v22  ;;  %vm709_vm6 = vcmp.gt.f32.partialorder %v3155_v13, %v3031_v54 }
 0x260   :  { %1471 = vrot.lane.b32.xlu1 %v2908_v34, %s2459_s9  ;;  %1469 = vrot.lane.b32.xlu0 %v2896_v0, %s2459_s9  ;;  %v1690_v58 = vsel %vm709_vm6, 1.0, %v2461_v62  ;;  %vm708_vm7 = vcmp.gt.f32.partialorder %v3158_v28, %v3020_v57  ;;  %v799_v59 = vadd.f32 %v777_v44, %v2770_v35  ;;  %v798_v18 = vadd.f32 %v775_v11, %v2764_v30 }
 0x261   :  { %1867 = vst [vmem:[#allocation21 + $0x10] sm:$0xff] %v1866_v42   ;;  %v822_v45 = vadd.f32 %v818_v1, %v814_v29  ;;  %v821_v3 = vadd.f32 %v817_v53, %v813_v46  ;;  %v721_v48 = vmul.f32 %v1690_v58, %v3096_v33  ;;  %v1689_v7 = vsel %vm708_vm7, 1.0, %v2461_v62 }
 0x262   :  { %v785_v43 = vpop.permute.xlu1 %784  ;;  %v783_v21 = vpop.permute.xlu0 %782  ;;  %v720_v63 = vmul.f32 %v1689_v7, %v3096_v33  ;;  %v812_v11 = vmul.f32 %v3155_v13, %v2988_v12 }
 0x263   :  { %v830_v41 = vsub.f32 %v822_v45, %v826_v17  ;;  %v829_v2 = vsub.f32 %v821_v3, %v825_v25 }
 0x264   :  { %1479 = vrot.lane.b32.xlu1 %v2908_v34, %s2446_s13  ;;  %1477 = vrot.lane.b32.xlu0 %v2896_v0, %s2446_s13  ;;  %v1876_v49 = vpack.c.bf16 %v721_v48, %v720_v63  ;;  %v823_v53 = vmul.f32 %v720_v63, %v3020_v57 }
 0x265   :  { %v834_v8 = vsub.f32 %v830_v41, %v3113_v24  ;;  %v833_v38 = vsub.f32 %v829_v2, %v3116_v39 }
 0x266   :  { %v793_v14 = vpop.permute.xlu1 %792  ;;  %v791_v10 = vpop.permute.xlu0 %790  ;;  %1877 = vst [vmem:[#allocation22 + $0x10] sm:$0xff] %v1876_v49  }
 0x267   :  { %v842_v33 = vmul.f32 %v3182_v16, %v834_v8  ;;  %v841_v60 = vmul.f32 %v3182_v16, %v833_v38  ;;  %v803_v32 = vadd.f32 %v793_v14, %v785_v43  ;;  %v802_v5 = vadd.f32 %v791_v10, %v783_v21 }
 0x268   :  { %1487 = vrot.lane.b32.xlu1 %v2908_v34, %s2460_s27  ;;  %1485 = vrot.lane.b32.xlu0 %v2896_v0, %s2460_s27  ;;  %v811_v0 = vmul.f32 %v3158_v28, %v2988_v12 }
 0x269   :  { %v3199_v29 = vadd.f32 %v842_v33, %v3113_v24  ;;  %v3202_v30 = vadd.f32 %v841_v60, %v3116_v39  ;;  %v807_v35 = vadd.f32 %v803_v32, %v799_v59  ;;  %v806_v44 = vadd.f32 %v802_v5, %v798_v18 }
 0x26a   :  { %v920_v42 = vpop.permute.xlu1 %919  ;;  %v918_v1 = vpop.permute.xlu0 %917  ;;  %v824_v39 = vmul.f32 %v721_v48, %v3031_v54 }
 0x26b   :  { %v1891_v46 = vpack.c.bf16 %v3199_v29, %v3202_v30  ;;  %v816_v34 = vmul.f32 %v807_v35, %v2991_v22  ;;  %v815_v24 = vmul.f32 %v806_v44, %v2991_v22  ;;  %vm850_vm8 = vcmp.gt.f32.partialorder %v3199_v29, %v3007_v55 }
 0x26c   :  { %1491 = vrot.lane.b32.xlu1 %v2901_v50, %s2460_s27  ;;  %1489 = vrot.lane.b32.xlu0 %v2892_v56, %s2460_s27  ;;  %v1705_v45 = vsel %vm850_vm8, 1.0, %v2461_v62  ;;  %vm849_vm9 = vcmp.gt.f32.partialorder %v3202_v30, %v2993_v26  ;;  %v940_v63 = vadd.f32 %v920_v42, %v2796_v4  ;;  %v939_v8 = vadd.f32 %v918_v1, %v2782_v51 }
 0x26d   :  { %2007 = vst [vmem:[#allocation21 + $0x28] sm:$0xff] %v1891_v46   ;;  %v820_v17 = vadd.f32 %v816_v34, %v812_v11  ;;  %v819_v25 = vadd.f32 %v815_v24, %v811_v0  ;;  %v862_v43 = vmul.f32 %v1705_v45, %v3182_v16  ;;  %v1704_v50 = vsel %vm849_vm9, 1.0, %v2461_v62 }
 0x26e   :  { %v928_v3 = vpop.permute.xlu1 %927  ;;  %v926_v58 = vpop.permute.xlu0 %925  ;;  %v861_v56 = vmul.f32 %v1704_v50, %v3182_v16  ;;  %v953_v51 = vmul.f32 %v3199_v29, %v2988_v12  ;;  %v952_v42 = vmul.f32 %v3202_v30, %v2988_v12 }
 0x26f   :  { %v828_v21 = vsub.f32 %v820_v17, %v824_v39  ;;  %v827_v48 = vsub.f32 %v819_v25, %v823_v53 }
 0x270   :  { %v1901_v2 = vpack.c.bf16 %v862_v43, %v861_v56  ;;  %v964_v1 = vmul.f32 %v861_v56, %v2993_v26 }
 0x271   :  { %v832_v7 = vsub.f32 %v828_v21, %v3155_v13  ;;  %v831_v41 = vsub.f32 %v827_v48, %v3158_v28 }
 0x272   :  { %v936_v38 = vpop.permute.xlu1 %935  ;;  %v934_v49 = vpop.permute.xlu0 %933  ;;  %2008 = vst [vmem:[#allocation22 + $0x28] sm:$0xff] %v1901_v2  }
 0x273   :  { %v840_v59 = vmul.f32 %v3182_v16, %v832_v7  ;;  %v839_v18 = vmul.f32 %v3182_v16, %v831_v41  ;;  %v944_v14 = vadd.f32 %v936_v38, %v928_v3  ;;  %v943_v10 = vadd.f32 %v934_v49, %v926_v58  ;;  %v3256_v58 = vld [vmem:[#allocation13 + $0x3] ss:$0 sm:$0xff] }
 0x275   :  { %v3233_v33 = vadd.f32 %v840_v59, %v3155_v13  ;;  %v3236_v60 = vadd.f32 %v839_v18, %v3158_v28  ;;  %v948_v32 = vadd.f32 %v944_v14, %v940_v63  ;;  %v947_v5 = vadd.f32 %v943_v10, %v939_v8 }
 0x276   :  { %v916_v4 = vpop.permute.xlu1 %915  ;;  %v914_v35 = vpop.permute.xlu0 %913  ;;  %v965_v28 = vmul.f32 %v862_v43, %v3007_v55 }
 0x277   :  { %v1886_v44 = vpack.c.bf16 %v3233_v33, %v3236_v60  ;;  %v957_v11 = vmul.f32 %v948_v32, %v2991_v22  ;;  %v956_v13 = vmul.f32 %v947_v5, %v2991_v22  ;;  %vm848_vm10 = vcmp.gt.f32.partialorder %v3233_v33, %v3031_v54 }
 0x278   :  { %vm847_vm11 = vcmp.gt.f32.partialorder %v3236_v60, %v3020_v57  ;;  %v1703_v0 = vsel %vm848_vm10, 1.0, %v2461_v62  ;;  %v938_v48 = vadd.f32 %v916_v4, %v2806_v6  ;;  %v937_v56 = vadd.f32 %v914_v35, %v2789_v61 }
 0x279   :  { %1887 = vst [vmem:[#allocation21 + $0x20] sm:$0xff] %v1886_v44   ;;  %v961_v46 = vadd.f32 %v957_v11, %v953_v51  ;;  %v960_v34 = vadd.f32 %v956_v13, %v952_v42  ;;  %v1702_v24 = vsel %vm847_vm11, 1.0, %v2461_v62  ;;  %v860_v17 = vmul.f32 %v1703_v0, %v3182_v16 }
 0x27a   :  { %v924_v39 = vpop.permute.xlu1 %923  ;;  %v922_v53 = vpop.permute.xlu0 %921  ;;  %v859_v25 = vmul.f32 %v1702_v24, %v3182_v16  ;;  %v951_v61 = vmul.f32 %v3233_v33, %v2988_v12  ;;  %v950_v5 = vmul.f32 %v3236_v60, %v2988_v12 }
 0x27b   :  { %v969_v45 = vsub.f32 %v961_v46, %v965_v28  ;;  %v968_v3 = vsub.f32 %v960_v34, %v964_v1 }
 0x27c   :  { %v1896_v43 = vpack.c.bf16 %v860_v17, %v859_v25  ;;  %v962_v51 = vmul.f32 %v859_v25, %v3020_v57 }
 0x27d   :  { %v973_v50 = vsub.f32 %v969_v45, %v3199_v29  ;;  %v972_v21 = vsub.f32 %v968_v3, %v3202_v30 }
 0x27e   :  { %v932_v7 = vpop.permute.xlu1 %931  ;;  %1897 = vst [vmem:[#allocation22 + $0x20] sm:$0xff] %v1896_v43   ;;  %v930_v41 = vpop.permute.xlu0 %929 }
 0x27f   :  { %v981_v2 = vmul.f32 %v3256_v58, %v973_v50  ;;  %v980_v16 = vmul.f32 %v3256_v58, %v972_v21  ;;  %v942_v63 = vadd.f32 %v932_v7, %v924_v39  ;;  %v941_v8 = vadd.f32 %v930_v41, %v922_v53 }
 0x281   :  { %v3265_v38 = vadd.f32 %v981_v2, %v3199_v29  ;;  %v3268_v49 = vadd.f32 %v980_v16, %v3202_v30  ;;  %v946_v59 = vadd.f32 %v942_v63, %v938_v48  ;;  %v945_v18 = vadd.f32 %v941_v8, %v937_v56 }
 0x282   :  { %v1059_v6 = vpop.permute.xlu1 %1058  ;;  %v1057_v14 = vpop.permute.xlu0 %1056  ;;  %v963_v30 = vmul.f32 %v860_v17, %v3031_v54 }
 0x283   :  { %v1911_v10 = vpack.c.bf16 %v3265_v38, %v3268_v49  ;;  %v955_v32 = vmul.f32 %v946_v59, %v2991_v22  ;;  %v954_v29 = vmul.f32 %v945_v18, %v2991_v22  ;;  %vm989_vm12 = vcmp.gt.f32.partialorder %v3265_v38, %v3007_v55 }
 0x284   :  { %vm988_vm13 = vcmp.gt.f32.partialorder %v3268_v49, %v2993_v26  ;;  %v1718_v44 = vsel %vm989_vm12, 1.0, %v2461_v62  ;;  %v1079_v53 = vadd.f32 %v1059_v6, %v2824_v19  ;;  %v1078_v17 = vadd.f32 %v1057_v14, %v2812_v9 }
 0x285   :  { %2009 = vst [vmem:[#allocation21 + $0x38] sm:$0xff] %v1911_v10   ;;  %v959_v4 = vadd.f32 %v955_v32, %v951_v61  ;;  %v958_v35 = vadd.f32 %v954_v29, %v950_v5  ;;  %v1717_v11 = vsel %vm988_vm13, 1.0, %v2461_v62  ;;  %v1001_v28 = vmul.f32 %v1718_v44, %v3256_v58 }
 0x286   :  { %v1067_v42 = vpop.permute.xlu1 %1066  ;;  %v1065_v13 = vpop.permute.xlu0 %1064  ;;  %v1000_v1 = vmul.f32 %v1717_v11, %v3256_v58  ;;  %v1092_v9 = vmul.f32 %v3265_v38, %v2988_v12  ;;  %v1091_v8 = vmul.f32 %v3268_v49, %v2988_v12 }
 0x287   :  { %v967_v46 = vsub.f32 %v959_v4, %v963_v30  ;;  %v966_v34 = vsub.f32 %v958_v35, %v962_v51  ;;  %v3318_v4 = vld [vmem:[#allocation13 + $0x4] ss:$0 sm:$0xff] }
 0x288   :  { %v1921_v0 = vpack.c.bf16 %v1001_v28, %v1000_v1  ;;  %v1103_v59 = vmul.f32 %v1000_v1, %v2993_v26 }
 0x289   :  { %v971_v24 = vsub.f32 %v967_v46, %v3233_v33  ;;  %v970_v39 = vsub.f32 %v966_v34, %v3236_v60 }
 0x28a   :  { %v1075_v25 = vpop.permute.xlu1 %1074  ;;  %2010 = vst [vmem:[#allocation22 + $0x38] sm:$0xff] %v1921_v0   ;;  %v1073_v45 = vpop.permute.xlu0 %1072 }
 0x28b   :  { %v979_v3 = vmul.f32 %v3256_v58, %v971_v24  ;;  %v978_v43 = vmul.f32 %v3256_v58, %v970_v39  ;;  %v1083_v50 = vadd.f32 %v1075_v25, %v1067_v42  ;;  %v1082_v21 = vadd.f32 %v1073_v45, %v1065_v13 }
 0x28d   :  { %v3295_v48 = vadd.f32 %v979_v3, %v3233_v33  ;;  %v3298_v56 = vadd.f32 %v978_v43, %v3236_v60  ;;  %v1087_v7 = vadd.f32 %v1083_v50, %v1079_v53  ;;  %v1086_v41 = vadd.f32 %v1082_v21, %v1078_v17 }
 0x28e   :  { %v1055_v19 = vpop.permute.xlu1 %1054  ;;  %v1053_v2 = vpop.permute.xlu0 %1052  ;;  %v1104_v60 = vmul.f32 %v1001_v28, %v3007_v55 }
 0x28f   :  { %v1906_v16 = vpack.c.bf16 %v3295_v48, %v3298_v56  ;;  %v1096_v63 = vmul.f32 %v1087_v7, %v2991_v22  ;;  %v1095_v33 = vmul.f32 %v1086_v41, %v2991_v22  ;;  %vm987_vm14 = vcmp.gt.f32.partialorder %v3295_v48, %v3031_v54 }
 0x290   :  { %vm986_vm15 = vcmp.gt.f32.partialorder %v3298_v56, %v3020_v57  ;;  %v1716_v6 = vsel %vm987_vm14, 1.0, %v2461_v62  ;;  %v1077_v42 = vadd.f32 %v1055_v19, %v2834_v20  ;;  %v1076_v13 = vadd.f32 %v1053_v2, %v2818_v15 }
 0x291   :  { %1907 = vst [vmem:[#allocation21 + $0x30] sm:$0xff] %v1906_v16   ;;  %v1100_v18 = vadd.f32 %v1096_v63, %v1092_v9  ;;  %v1099_v61 = vadd.f32 %v1095_v33, %v1091_v8  ;;  %v1715_v14 = vsel %vm986_vm15, 1.0, %v2461_v62  ;;  %v999_v5 = vmul.f32 %v1716_v6, %v3256_v58 }
 0x292   :  { %v1063_v10 = vpop.permute.xlu1 %1062  ;;  %v1061_v32 = vpop.permute.xlu0 %1060  ;;  %v998_v29 = vmul.f32 %v1715_v14, %v3256_v58  ;;  %v1090_v15 = vmul.f32 %v3295_v48, %v2988_v12  ;;  %v1089_v43 = vmul.f32 %v3298_v56, %v2988_v12 }
 0x293   :  { %v1108_v30 = vsub.f32 %v1100_v18, %v1104_v60  ;;  %v1107_v51 = vsub.f32 %v1099_v61, %v1103_v59 }
 0x294   :  { %v1916_v35 = vpack.c.bf16 %v999_v5, %v998_v29  ;;  %v1101_v50 = vmul.f32 %v998_v29, %v3020_v57 }
 0x295   :  { %v1112_v44 = vsub.f32 %v1108_v30, %v3265_v38  ;;  %v1111_v11 = vsub.f32 %v1107_v51, %v3268_v49 }
 0x296   :  { %v1071_v28 = vpop.permute.xlu1 %1070  ;;  %1917 = vst [vmem:[#allocation22 + $0x30] sm:$0xff] %v1916_v35   ;;  %v1069_v1 = vpop.permute.xlu0 %1068 }
 0x297   :  { %v1120_v46 = vmul.f32 %v3318_v4, %v1112_v44  ;;  %v1119_v58 = vmul.f32 %v3318_v4, %v1111_v11  ;;  %v1081_v34 = vadd.f32 %v1071_v28, %v1063_v10  ;;  %v1080_v0 = vadd.f32 %v1069_v1, %v1061_v32 }
 0x299   :  { %v3327_v24 = vadd.f32 %v1120_v46, %v3265_v38  ;;  %v3330_v39 = vadd.f32 %v1119_v58, %v3268_v49  ;;  %v1085_v53 = vadd.f32 %v1081_v34, %v1077_v42  ;;  %v1084_v17 = vadd.f32 %v1080_v0, %v1076_v13 }
 0x29a   :  { %v1198_v20 = vpop.permute.xlu1 %1197  ;;  %v1196_v25 = vpop.permute.xlu0 %1195  ;;  %v1102_v49 = vmul.f32 %v999_v5, %v3031_v54 }
 0x29b   :  { %v1931_v45 = vpack.c.bf16 %v3327_v24, %v3330_v39  ;;  %v1094_v3 = vmul.f32 %v1085_v53, %v2991_v22  ;;  %v1093_v38 = vmul.f32 %v1084_v17, %v2991_v22  ;;  %vm1128_vm0 = vcmp.gt.f32.partialorder %v3327_v24, %v3007_v55 }
 0x29c   :  { %vm1127_vm1 = vcmp.gt.f32.partialorder %v3330_v39, %v2993_v26  ;;  %v1731_v41 = vsel %vm1128_vm0, 1.0, %v2461_v62  ;;  %v1218_v61 = vadd.f32 %v1198_v20, %v2852_v31  ;;  %v1217_v6 = vadd.f32 %v1196_v25, %v2840_v23 }
 0x29d   :  { %2011 = vst [vmem:[#allocation21 + $0x48] sm:$0xff] %v1931_v45   ;;  %v1098_v21 = vadd.f32 %v1094_v3, %v1090_v15  ;;  %v1097_v7 = vadd.f32 %v1093_v38, %v1089_v43  ;;  %v1730_v9 = vsel %vm1127_vm1, 1.0, %v2461_v62  ;;  %v1140_v16 = vmul.f32 %v1731_v41, %v3318_v4  ;;  %v3380_v43 = vld [vmem:[#allocation13 + $0x5] ss:$0 sm:$0xff] }
 0x29e   :  { %v1206_v19 = vpop.permute.xlu1 %1205  ;;  %v1204_v2 = vpop.permute.xlu0 %1203  ;;  %v1139_v63 = vmul.f32 %v1730_v9, %v3318_v4  ;;  %v1231_v23 = vmul.f32 %v3327_v24, %v2988_v12  ;;  %v1230_v1 = vmul.f32 %v3330_v39, %v2988_v12 }
 0x29f   :  { %v1106_v8 = vsub.f32 %v1098_v21, %v1102_v49  ;;  %v1105_v33 = vsub.f32 %v1097_v7, %v1101_v50 }
 0x2a0   :  { %v1941_v60 = vpack.c.bf16 %v1140_v16, %v1139_v63  ;;  %v1242_v46 = vmul.f32 %v1139_v63, %v2993_v26 }
 0x2a1   :  { %v1110_v59 = vsub.f32 %v1106_v8, %v3295_v48  ;;  %v1109_v18 = vsub.f32 %v1105_v33, %v3298_v56 }
 0x2a2   :  { %v1214_v14 = vpop.permute.xlu1 %1213  ;;  %2012 = vst [vmem:[#allocation22 + $0x48] sm:$0xff] %v1941_v60   ;;  %v1212_v10 = vpop.permute.xlu0 %1211 }
 0x2a3   :  { %v1118_v32 = vmul.f32 %v3318_v4, %v1110_v59  ;;  %v1117_v5 = vmul.f32 %v3318_v4, %v1109_v18  ;;  %v1222_v29 = vadd.f32 %v1214_v14, %v1206_v19  ;;  %v1221_v30 = vadd.f32 %v1212_v10, %v1204_v2 }
 0x2a5   :  { %v3357_v51 = vadd.f32 %v1118_v32, %v3295_v48  ;;  %v3360_v35 = vadd.f32 %v1117_v5, %v3298_v56  ;;  %v1226_v44 = vadd.f32 %v1222_v29, %v1218_v61  ;;  %v1225_v11 = vadd.f32 %v1221_v30, %v1217_v6 }
 0x2a6   :  { %v1194_v31 = vpop.permute.xlu1 %1193  ;;  %v1192_v42 = vpop.permute.xlu0 %1191  ;;  %v1243_v56 = vmul.f32 %v1140_v16, %v3007_v55 }
 0x2a7   :  { %v1926_v13 = vpack.c.bf16 %v3357_v51, %v3360_v35  ;;  %v1235_v28 = vmul.f32 %v1226_v44, %v2991_v22  ;;  %v1234_v48 = vmul.f32 %v1225_v11, %v2991_v22  ;;  %vm1126_vm2 = vcmp.gt.f32.partialorder %v3357_v51, %v3031_v54 }
 0x2a8   :  { %vm1125_vm3 = vcmp.gt.f32.partialorder %v3360_v35, %v3020_v57  ;;  %v1729_v0 = vsel %vm1126_vm2, 1.0, %v2461_v62  ;;  %v1216_v21 = vadd.f32 %v1194_v31, %v2862_v36  ;;  %v1215_v7 = vadd.f32 %v1192_v42, %v2846_v27 }
 0x2a9   :  { %1927 = vst [vmem:[#allocation21 + $0x40] sm:$0xff] %v1926_v13   ;;  %v1239_v58 = vadd.f32 %v1235_v28, %v1231_v23  ;;  %v1238_v34 = vadd.f32 %v1234_v48, %v1230_v1  ;;  %v1728_v53 = vsel %vm1125_vm3, 1.0, %v2461_v62  ;;  %v1138_v20 = vmul.f32 %v1729_v0, %v3318_v4 }
 0x2aa   :  { %v1202_v17 = vpop.permute.xlu1 %1201  ;;  %v1200_v15 = vpop.permute.xlu0 %1199  ;;  %v1137_v25 = vmul.f32 %v1728_v53, %v3318_v4  ;;  %v1229_v27 = vmul.f32 %v3357_v51, %v2988_v12  ;;  %v1228_v6 = vmul.f32 %v3360_v35, %v2988_v12 }
 0x2ab   :  { %v1247_v45 = vsub.f32 %v1239_v58, %v1243_v56  ;;  %v1246_v3 = vsub.f32 %v1238_v34, %v1242_v46 }
 0x2ac   :  { %v1936_v38 = vpack.c.bf16 %v1138_v20, %v1137_v25  ;;  %v1240_v14 = vmul.f32 %v1137_v25, %v3020_v57 }
 0x2ad   :  { %v1251_v49 = vsub.f32 %v1247_v45, %v3327_v24  ;;  %v1250_v50 = vsub.f32 %v1246_v3, %v3330_v39 }
 0x2ae   :  { %v1210_v41 = vpop.permute.xlu1 %1209  ;;  %1937 = vst [vmem:[#allocation22 + $0x40] sm:$0xff] %v1936_v38   ;;  %v1208_v9 = vpop.permute.xlu0 %1207 }
 0x2af   :  { %v1259_v19 = vmul.f32 %v3380_v43, %v1251_v49  ;;  %v1258_v4 = vmul.f32 %v3380_v43, %v1250_v50  ;;  %v1220_v2 = vadd.f32 %v1210_v41, %v1202_v17  ;;  %v1219_v16 = vadd.f32 %v1208_v9, %v1200_v15  ;;  %v3433_v50 = vld [vmem:[#allocation19 + $0x10] sm:$0xff] }
 0x2b1   :  { %v3389_v63 = vadd.f32 %v1259_v19, %v3327_v24  ;;  %v3392_v8 = vadd.f32 %v1258_v4, %v3330_v39  ;;  %v1224_v33 = vadd.f32 %v1220_v2, %v1216_v21  ;;  %v1223_v60 = vadd.f32 %v1219_v16, %v1215_v7 }
 0x2b2   :  { %v1337_v36 = vpop.permute.xlu1 %1336  ;;  %v1335_v59 = vpop.permute.xlu0 %1334  ;;  %v1241_v39 = vmul.f32 %v1138_v20, %v3031_v54 }
 0x2b3   :  { %v1951_v18 = vpack.c.bf16 %v3389_v63, %v3392_v8  ;;  %v1233_v61 = vmul.f32 %v1224_v33, %v2991_v22  ;;  %v1232_v24 = vmul.f32 %v1223_v60, %v2991_v22  ;;  %vm1267_vm4 = vcmp.gt.f32.partialorder %v3389_v63, %v3007_v55 }
 0x2b4   :  { %vm1266_vm5 = vcmp.gt.f32.partialorder %v3392_v8, %v2993_v26  ;;  %v1744_v5 = vsel %vm1267_vm4, 1.0, %v2461_v62  ;;  %v1357_v1 = vadd.f32 %v1337_v36, %v2878_v52  ;;  %v1356_v48 = vadd.f32 %v1335_v59, %v2868_v40 }
 0x2b5   :  { %2013 = vst [vmem:[#allocation21 + $0x58] sm:$0xff] %v1951_v18   ;;  %v1237_v10 = vadd.f32 %v1233_v61, %v1229_v27  ;;  %v1236_v32 = vadd.f32 %v1232_v24, %v1228_v6  ;;  %v1743_v29 = vsel %vm1266_vm5, 1.0, %v2461_v62  ;;  %v1279_v11 = vmul.f32 %v1744_v5, %v3380_v43  ;;  %v1753_v27 = vld [vmem:[#allocation13 + $0x6] ss:$0 sm:$0xff] }
 0x2b6   :  { %v1345_v30 = vpop.permute.xlu1 %1344  ;;  %v1343_v44 = vpop.permute.xlu0 %1342  ;;  %v1278_v23 = vmul.f32 %v1743_v29, %v3380_v43  ;;  %v1370_v40 = vmul.f32 %v3389_v63, %v2988_v12  ;;  %v1369_v49 = vmul.f32 %v3392_v8, %v2988_v12 }
 0x2b7   :  { %v1245_v31 = vsub.f32 %v1237_v10, %v1241_v39  ;;  %v1244_v42 = vsub.f32 %v1236_v32, %v1240_v14 }
 0x2b8   :  { %v1961_v13 = vpack.c.bf16 %v1279_v11, %v1278_v23  ;;  %v1381_v21 = vmul.f32 %v3433_v50, %v1278_v23 }
 0x2b9   :  { %v1249_v28 = vsub.f32 %v1245_v31, %v3357_v51  ;;  %v1248_v26 = vsub.f32 %v1244_v42, %v3360_v35  ;;  %v3463_v42 = vld [vmem:[#allocation19] sm:$0xff] }
 0x2ba   :  { %v1353_v56 = vpop.permute.xlu1 %1352  ;;  %2014 = vst [vmem:[#allocation22 + $0x58] sm:$0xff] %v1961_v13   ;;  %v1351_v46 = vpop.permute.xlu0 %1350 }
 0x2bb   :  { %v1257_v58 = vmul.f32 %v3380_v43, %v1249_v28  ;;  %v1256_v34 = vmul.f32 %v3380_v43, %v1248_v26  ;;  %v1361_v0 = vadd.f32 %v1353_v56, %v1345_v30  ;;  %v1360_v53 = vadd.f32 %v1351_v46, %v1343_v44  ;;  %v3466_v28 = vld [vmem:[#allocation19 + $0x18] sm:$0xff] }
 0x2bd   :  { %v3419_v17 = vadd.f32 %v1257_v58, %v3357_v51  ;;  %v3422_v15 = vadd.f32 %v1256_v34, %v3360_v35  ;;  %v1365_v20 = vadd.f32 %v1361_v0, %v1357_v1  ;;  %v1364_v25 = vadd.f32 %v1360_v53, %v1356_v48 }
 0x2be   :  { %v1333_v52 = vpop.permute.xlu1 %1332  ;;  %v1331_v45 = vpop.permute.xlu0 %1330  ;;  %v1382_v35 = vmul.f32 %v1279_v11, %v3007_v55 }
 0x2bf   :  { %v1946_v3 = vpack.c.bf16 %v3419_v17, %v3422_v15  ;;  %v1374_v38 = vmul.f32 %v1365_v20, %v2991_v22  ;;  %v1373_v51 = vmul.f32 %v1364_v25, %v2991_v22  ;;  %vm1265_vm6 = vcmp.gt.f32.partialorder %v3419_v17, %v3031_v54 }
 0x2c0   :  { %vm1264_vm7 = vcmp.gt.f32.partialorder %v3422_v15, %v3020_v57  ;;  %v1742_v9 = vsel %vm1265_vm6, 1.0, %v2461_v62  ;;  %v1355_v18 = vadd.f32 %v1333_v52, %v2887_v37  ;;  %v1354_v61 = vadd.f32 %v1331_v45, %v2873_v47 }
 0x2c1   :  { %1947 = vst [vmem:[#allocation21 + $0x50] sm:$0xff] %v1946_v3   ;;  %v1378_v7 = vadd.f32 %v1374_v38, %v1370_v40  ;;  %v1377_v41 = vadd.f32 %v1373_v51, %v1369_v49  ;;  %v1741_v19 = vsel %vm1264_vm7, 1.0, %v2461_v62  ;;  %v1277_v55 = vmul.f32 %v1742_v9, %v3380_v43 }
 0x2c2   :  { %v1341_v4 = vpop.permute.xlu1 %1340  ;;  %v1339_v2 = vpop.permute.xlu0 %1338  ;;  %v1276_v16 = vmul.f32 %v1741_v19, %v3380_v43  ;;  %v1368_v37 = vmul.f32 %v3419_v17, %v2988_v12  ;;  %v1367_v31 = vmul.f32 %v3422_v15, %v2988_v12 }
 0x2c3   :  { %v1386_v33 = vsub.f32 %v1378_v7, %v1382_v35  ;;  %v1385_v60 = vsub.f32 %v1377_v41, %v1381_v21  ;;  %v3481_v41 = vld [vmem:[#allocation19 + $0x8] sm:$0xff] }
 0x2c4   :  { %v1956_v36 = vpack.c.bf16 %v1277_v55, %v1276_v16  ;;  %v1379_v13 = vmul.f32 %v3463_v42, %v1276_v16  ;;  %v2139_v16 = vld [vmem:[#allocation24 + $0x8] sm:$0xff] }
 0x2c5   :  { %v1390_v59 = vsub.f32 %v1386_v33, %v3389_v63  ;;  %v1389_v57 = vsub.f32 %v1385_v60, %v3392_v8 }
 0x2c6   :  { %v1349_v6 = vpop.permute.xlu1 %1348  ;;  %1957 = vst [vmem:[#allocation22 + $0x50] sm:$0xff] %v1956_v36   ;;  %v1347_v24 = vpop.permute.xlu0 %1346  ;;  %v2140_v36 = vld [vmem:[#allocation24] sm:$0xff] }
 0x2c7   :  { %v1398_v39 = vmul.f32 %v1753_v27, %v1390_v59  ;;  %v1397_v14 = vmul.f32 %v1753_v27, %v1389_v57  ;;  %v1359_v10 = vadd.f32 %v1349_v6, %v1341_v4  ;;  %v1358_v32 = vadd.f32 %v1347_v24, %v1339_v2  ;;  %v2142_v24 = vld [vmem:[#allocation24 + $0x10] sm:$0xff] }
 0x2c9   :  { %v3449_v43 = vadd.f32 %v1398_v39, %v3389_v63  ;;  %v3452_v5 = vadd.f32 %v1397_v14, %v3392_v8  ;;  %v1363_v29 = vadd.f32 %v1359_v10, %v1355_v18  ;;  %v1362_v30 = vadd.f32 %v1358_v32, %v1354_v61  ;;  %v2141_v61 = vld [vmem:[#allocation24 + $0x18] sm:$0xff] }
 0x2ca   :  { %v1476_v44 = vpop.permute.xlu1 %1475  ;;  %v1474_v47 = vpop.permute.xlu0 %1473  ;;  %v1380_v8 = vmul.f32 %v1277_v55, %v3031_v54 }
 0x2cb   :  { %v1971_v11 = vpack.c.bf16 %v3449_v43, %v3452_v5  ;;  %v1372_v23 = vmul.f32 %v1363_v29, %v2991_v22  ;;  %v1371_v63 = vmul.f32 %v1362_v30, %v2991_v22  ;;  %vm1406_vm8 = vcmp.gt.f32.partialorder %v3449_v43, %v3466_v28 }
 0x2cc   :  { %vm1405_vm9 = vcmp.gt.f32.partialorder %v3452_v5, %v3433_v50  ;;  %v1757_v48 = vsel %vm1406_vm8, 1.0, %v2461_v62  ;;  %v1496_v6 = vadd.f32 %v2141_v61, %v1476_v44  ;;  %v1495_v39 = vadd.f32 %v2142_v24, %v1474_v47 }
 0x2cd   :  { %2015 = vst [vmem:[#allocation21 + $0x68] sm:$0xff] %v1971_v11   ;;  %v1376_v26 = vadd.f32 %v1372_v23, %v1368_v37  ;;  %v1375_v1 = vadd.f32 %v1371_v63, %v1367_v31  ;;  %v1756_v56 = vsel %vm1405_vm9, 1.0, %v2461_v62  ;;  %v1418_v58 = vmul.f32 %v1757_v48, %v1753_v27 }
 0x2ce   :  { %v1484_v54 = vpop.permute.xlu1 %1483  ;;  %v1482_v46 = vpop.permute.xlu0 %1481  ;;  %v3474_v34 = vmul.f32 %v1756_v56, %v1753_v27  ;;  %v1508_v56 = vmul.f32 %v3452_v5, %v2988_v12 }
 0x2cf   :  { %v1384_v0 = vsub.f32 %v1376_v26, %v1380_v8  ;;  %v1383_v53 = vsub.f32 %v1375_v1, %v1379_v13  ;;  %v1509_v26 = vmul.f32 %v3449_v43, %v2988_v12 }
 0x2d0   :  { %v1981_v20 = vpack.c.bf16 %v1418_v58, %v3474_v34 }
 0x2d1   :  { %v1388_v25 = vsub.f32 %v1384_v0, %v3419_v17  ;;  %v1387_v40 = vsub.f32 %v1383_v53, %v3422_v15  ;;  %v1521_v53 = vmul.f32 %v3466_v28, %v1418_v58 }
 0x2d2   :  { %v1472_v52 = vpop.permute.xlu1 %1471  ;;  %v1470_v45 = vpop.permute.xlu0 %1469  ;;  %2016 = vst [vmem:[#allocation22 + $0x68] sm:$0xff] %v1981_v20  }
 0x2d3   :  { %v1396_v3 = vmul.f32 %v1753_v27, %v1388_v25  ;;  %v1395_v38 = vmul.f32 %v1753_v27, %v1387_v40  ;;  %v1493_v59 = vadd.f32 %v2140_v36, %v1470_v45  ;;  %v1520_v40 = vmul.f32 %v3433_v50, %v3474_v34 }
 0x2d5   :  { %v1400_v49 = vadd.f32 %v1396_v3, %v3419_v17  ;;  %v1399_v51 = vadd.f32 %v1395_v38, %v3422_v15  ;;  %v1494_v15 = vadd.f32 %v2139_v16, %v1472_v52 }
 0x2d6   :  { %v1480_v35 = vpop.permute.xlu1 %1479  ;;  %v1478_v21 = vpop.permute.xlu0 %1477 }
 0x2d7   :  { %v1966_v7 = vpack.c.bf16 %v1400_v49, %v1399_v51  ;;  %vm1404_vm10 = vcmp.gt.f32.partialorder %v1400_v49, %v3481_v41  ;;  %vm1403_vm11 = vcmp.gt.f32.partialorder %v1399_v51, %v3463_v42  ;;  %v1506_v11 = vmul.f32 %v1399_v51, %v2988_v12 }
 0x2d8   :  { %v1755_v9 = vsel %vm1404_vm10, 1.0, %v2461_v62  ;;  %v1754_v19 = vsel %vm1403_vm11, 1.0, %v2461_v62 }
 0x2d9   :  { %1967 = vst [vmem:[#allocation21 + $0x60] sm:$0xff] %v1966_v7   ;;  %v1416_v4 = vmul.f32 %v1755_v9, %v1753_v27  ;;  %v1415_v2 = vmul.f32 %v1754_v19, %v1753_v27  ;;  %v1507_v27 = vmul.f32 %v1400_v49, %v2988_v12 }
 0x2da   :  { %v1488_v55 = vpop.permute.xlu1 %1487  ;;  %v1486_v17 = vpop.permute.xlu0 %1485 }
 0x2db   :  { %v1498_v33 = vadd.f32 %v1488_v55, %v1480_v35  ;;  %v1976_v60 = vpack.c.bf16 %v1416_v4, %v1415_v2  ;;  %v1497_v57 = vadd.f32 %v1486_v17, %v1478_v21  ;;  %v1519_v63 = vmul.f32 %v3481_v41, %v1416_v4 }
 0x2dc   :  { %v1518_v47 = vmul.f32 %v3463_v42, %v1415_v2 }
 0x2dd   :  { %v1502_v18 = vadd.f32 %v1498_v33, %v1494_v15  ;;  %1977 = vst [vmem:[#allocation22 + $0x60] sm:$0xff] %v1976_v60   ;;  %v1501_v14 = vadd.f32 %v1497_v57, %v1493_v59 }
 0x2de   :  { %v1492_v10 = vpop.permute.xlu1 %1491  ;;  %v1490_v32 = vpop.permute.xlu0 %1489 }
 0x2df   :  { %v1511_v29 = vmul.f32 %v1502_v18, %v2991_v22  ;;  %v1500_v30 = vadd.f32 %v1492_v10, %v1484_v54  ;;  %v1499_v37 = vadd.f32 %v1490_v32, %v1482_v46  ;;  %v1510_v23 = vmul.f32 %v1501_v14, %v2991_v22  ;;  %v1766_v46 = vld [vmem:[#allocation13 + $0x7] ss:$0 sm:$0xff] }
 0x2e1   :  { %v1515_v31 = vadd.f32 %v1511_v29, %v1507_v27  ;;  %v1504_v8 = vadd.f32 %v1500_v30, %v1496_v6  ;;  %v1503_v44 = vadd.f32 %v1499_v37, %v1495_v39  ;;  %v1514_v13 = vadd.f32 %v1510_v23, %v1506_v11 }
 0x2e3   :  { %v1523_v1 = vsub.f32 %v1515_v31, %v1519_v63  ;;  %v1513_v48 = vmul.f32 %v1504_v8, %v2991_v22  ;;  %v1512_v54 = vmul.f32 %v1503_v44, %v2991_v22  ;;  %v1522_v0 = vsub.f32 %v1514_v13, %v1518_v47 }
 0x2e5   :  { %v1527_v20 = vsub.f32 %v1523_v1, %v1400_v49  ;;  %v1517_v25 = vadd.f32 %v1513_v48, %v1509_v26  ;;  %v1516_v52 = vadd.f32 %v1512_v54, %v1508_v56  ;;  %v1526_v45 = vsub.f32 %v1522_v0, %v1399_v51 }
 0x2e7   :  { %v1535_v3 = vmul.f32 %v1766_v46, %v1527_v20  ;;  %v1525_v38 = vsub.f32 %v1517_v25, %v1521_v53  ;;  %v1524_v35 = vsub.f32 %v1516_v52, %v1520_v40  ;;  %v1534_v21 = vmul.f32 %v1766_v46, %v1526_v45 }
 0x2e9   :  { %v1539_v7 = vadd.f32 %v1535_v3, %v1400_v49  ;;  %v1529_v12 = vsub.f32 %v1525_v38, %v3449_v43  ;;  %v1528_v22 = vsub.f32 %v1524_v35, %v3452_v5  ;;  %v1538_v9 = vadd.f32 %v1534_v21, %v1399_v51 }
 0x2eb   :  { %vm1543_vm12 = vcmp.gt.f32.partialorder %v1539_v7, %v3481_v41  ;;  %v1537_v58 = vmul.f32 %v1766_v46, %v1529_v12  ;;  %v1536_v19 = vmul.f32 %v1766_v46, %v1528_v22  ;;  %vm1542_vm13 = vcmp.gt.f32.partialorder %v1538_v9, %v3463_v42 }
 0x2ec   :  { %v1768_v4 = vsel %vm1543_vm12, 1.0, %v2461_v62  ;;  %v1986_v34 = vpack.c.bf16 %v1539_v7, %v1538_v9  ;;  %v1767_v55 = vsel %vm1542_vm13, 1.0, %v2461_v62 }
 0x2ed   :  { %v1555_v2 = vmul.f32 %v1768_v4, %v1766_v46  ;;  %v1541_v49 = vadd.f32 %v1537_v58, %v3449_v43  ;;  %v1540_v17 = vadd.f32 %v1536_v19, %v3452_v5  ;;  %v1554_v16 = vmul.f32 %v1767_v55, %v1766_v46 }
 0x2ee   :  { %1987 = vst [vmem:[#allocation21 + $0x70] sm:$0xff] %v1986_v34  }
 0x2ef   :  { %vm1545_vm14 = vcmp.gt.f32.partialorder %v1541_v49, %v3466_v28  ;;  %vm1544_vm15 = vcmp.gt.f32.partialorder %v1540_v17, %v3433_v50  ;;  %v1991_v51 = vpack.c.bf16 %v1541_v49, %v1540_v17  ;;  %v1996_v41 = vpack.c.bf16 %v1555_v2, %v1554_v16 }
 0x2f0   :  { %v1770_v42 = vsel %vm1545_vm14, 1.0, %v2461_v62  ;;  %v1769_v15 = vsel %vm1544_vm15, 1.0, %v2461_v62 }
 0x2f1   :  { %v1557_v33 = vmul.f32 %v1770_v42, %v1766_v46  ;;  %v1556_v60 = vmul.f32 %v1769_v15, %v1766_v46  ;;  %2017 = vst [vmem:[#allocation21 + $0x78] sm:$0xff] %v1991_v51   ;;  %1997 = vst [vmem:[#allocation22 + $0x70] sm:$0xff] %v1996_v41  }
 0x2f2   :  { %2374 = shalt.err (!%p2371_p0)
}
 0x2f3   :  { %s2375_s3 = scalar_lea.hbm %s3576_s10, 2048 }
 0x2f4   :  { %p2376_p1 = scmp.ne.s32.totalorder %s3576_s10, %s2375_s3  ;;  %p2379_p2 = scmp.lt.u32.totalorder %s2375_s3, %s3576_s10 }
 0x2f6   :  { %p2381_p3 = pnand %p2379_p2, %p2376_p1 }
 0x2f8   :  { %2384 = shalt.err (!%p2381_p3)
}
 0x2f9   :  { %1623 = dma.vmem_to_hbm [thread:$0]  %s1618_s17, 2048, %s3576_s10, [#allocation6], %s2446_s13, %s2446_s13, %s2447_s14   ;;  %v2001_v62 = vpack.c.bf16 %v1557_v33, %v1556_v60 }
 0x2fa   :  { %s2385_s30 = scalar_lea.vmem %s1630_s23, 2048  ;;  %p2390_p5 = scmp.lt.s32.totalorder %s1630_s23, %s1630_s23 }
 0x2fb   :  { %2018 = vst [vmem:[#allocation22 + $0x78] sm:$0xff] %v2001_v62   ;;  %p2386_p4 = scmp.ne.s32.totalorder %s1630_s23, %s2385_s30  ;;  %p2391_p6 = scmp.lt.s32.totalorder %s2385_s30, %s2385_s30 }
 0x2fd   :  { %p2392_p7 = por %p2391_p6, %p2390_p5 }
 0x2ff   :  { %p2393_p8 = pnand %p2392_p7, %p2386_p4 }
 0x301   :  { %2396 = shalt.err (!%p2393_p8)
}
 0x302   :  { %s2397_s19 = scalar_lea.hbm %s3577_s11, 2048 }
 0x303   :  { %p2398_p9 = scmp.ne.s32.totalorder %s3577_s11, %s2397_s19  ;;  %p2401_p10 = scmp.lt.u32.totalorder %s2397_s19, %s3577_s11 }
 0x305   :  { %p2403_p11 = pnand %p2401_p10, %p2398_p9 }
 0x307   :  { %2406 = shalt.err (!%p2403_p11)
}
 0x308   :  { %1635 = dma.vmem_to_hbm [thread:$0]  %s1630_s23, 2048, %s3577_s11, [#allocation23], %s2446_s13, %s2446_s13, %s2447_s14  }
 0x309   :  { %s2407_s17 = scalar_lea.vmem %s3529_s2, 512  ;;  %p2412_p13 = scmp.lt.s32.totalorder %s3529_s2, %s3529_s2 }
 0x30a   :  { %p2408_p12 = scmp.ne.s32.totalorder %s3529_s2, %s2407_s17  ;;  %p2413_p0 = scmp.lt.s32.totalorder %s2407_s17, %s2407_s17 }
 0x30c   :  { %p2414_p1 = por %p2413_p0, %p2412_p13 }
 0x30e   :  { %p2415_p2 = pnand %p2414_p1, %p2408_p12 }
 0x310   :  { %2418 = shalt.err (!%p2415_p2)
}
 0x311   :  { %s2419_s16 = scalar_lea.hbm %s3578_s12, 512 }
 0x312   :  { %p2420_p3 = scmp.ne.s32.totalorder %s3578_s12, %s2419_s16  ;;  %p2423_p4 = scmp.lt.u32.totalorder %s2419_s16, %s3578_s12 }
 0x314   :  { %p2425_p5 = pnand %p2423_p4, %p2420_p3 }
 0x316   :  { %2428 = shalt.err (!%p2425_p5)
}
 0x317   :  { %1647 = dma.vmem_to_hbm [thread:$0]  %s3529_s2, 512, %s3578_s12, [#allocation23], %s2452_s20, %s2452_s20, %s2453_s21  }
 0x318   :  { %2441 = dma.done.wait [#allocation6], 2048  }
 0x319   :  { %2442 = vsyncadd [#allocation6], 4294965248 }
 0x31a   :  { %2443 = dma.done.wait [#allocation23], 2560  }
 0x31b   :  { %2444 = vsyncadd [#allocation23], 4294964736 }
 0x31c   :  { %1657 = vsyncpa [#allocation5], 1 }
 0x31d   :  { %1658 = vsyncpa [#allocation8], 1 }
 0x31e   :  { %1659 = vsyncpa [#allocation11], 1 }
 0x31f   :  { %1660 = vsyncpa [#allocation14], 1 }
 0x320   :  { %1661 = vsyncpa [#allocation17], 1 }
 0x321   :  { %1662 = vsyncpa [#allocation20], 1 }
 0x322   :  { %1663 = vsyncpa [#allocation6], 1 }
 0x323   :  { %1664 = vsyncpa [#allocation23], 1 }

</bundles_post_ra>
